<compile_context>
chip_gen: v6e
topology: v6e:2x2x1
jax: 0.10.0
libtpu: 0.0.40
codegen_flags: <defaults>
</compile_context>

<pallas_src>
import functools

import jax
import jax.numpy as jnp
from jax import lax
from jax.experimental import pallas as pl
from jax.experimental.pallas import tpu as pltpu


# ----------------------------------------------------------------------------
# Pallas kernels
# ----------------------------------------------------------------------------

def _layer_norm(x, g, b, eps=1e-5):
    mu = jnp.mean(x, axis=-1, keepdims=True)
    var = jnp.mean((x - mu) ** 2, axis=-1, keepdims=True)
    return (x - mu) * lax.rsqrt(var + eps) * g + b


def _encoder_kernel(nhead,
                    tok_ref, am_ref, adj_ref,
                    proj_w_ref, proj_b_ref,
                    dag_ws_ref, dag_wn_ref,
                    wqkv_ref, bqkv_ref,
                    wo_ref, bo_ref, ln_ref,
                    w1_ref, b1_ref, w2_ref, b2_ref,
                    o_ref):
    f32 = jnp.float32
    tok = tok_ref[0]                       # (N, T, D)
    am = am_ref[0]                         # (N, T)

    # ---- masked mean pooling over tokens -----------------------------------
    summed = jnp.sum(tok * am[:, :, None], axis=1)                       # (N, D)
    cnt = jnp.maximum(jnp.sum(am, axis=1, keepdims=True), 1.0)           # (N, 1)
    pooled = summed / cnt

    # ---- projection ---------------------------------------------------------
    h = jnp.dot(pooled, proj_w_ref[...], preferred_element_type=f32) + proj_b_ref[...]

    # ---- DAG aggregation: ReLU(h Ws + (A_norm h) Wn) ------------------------
    adj = adj_ref[0]                                                     # (N, N)
    nb = jnp.dot(adj, h, preferred_element_type=f32)
    h = jnp.maximum(
        jnp.dot(h, dag_ws_ref[...], preferred_element_type=f32)
        + jnp.dot(nb, dag_wn_ref[...], preferred_element_type=f32), 0.0)

    # ---- transformer encoder layer (fused QKV, per-head attention) ----------
    # TODO(synk): no key-padding / conversation-length mask is applied here; the
    # toy inputs have no padded utterances.
    N, D = h.shape
    dh = D // nhead
    scale = 1.0 / (dh ** 0.5)
    qkv = jnp.dot(h, wqkv_ref[...], preferred_element_type=f32) + bqkv_ref[...]  # (N, 3D)

    attn_out = bo_ref[...]                                               # (1, D) -> (N, D)
    for hd in range(nhead):
        lo = hd * dh
        qh = qkv[:, lo:lo + dh]
        kh = qkv[:, D + lo:D + lo + dh]
        vh = qkv[:, 2 * D + lo:2 * D + lo + dh]
        s = lax.dot_general(qh, kh, (((1,), (1,)), ((), ())),
                            preferred_element_type=f32) * scale          # (N, N)
        s = s - jnp.max(s, axis=-1, keepdims=True)
        p = jnp.exp(s)
        p = p * pl.reciprocal(jnp.sum(p, axis=-1, keepdims=True), approx=True)
        ctx_h = jnp.dot(p, vh, preferred_element_type=f32)               # (N, dh)
        # fold the output projection per head: ctx @ Wo == sum_h ctx_h @ Wo[rows]
        attn_out = attn_out + jnp.dot(ctx_h, wo_ref[lo:lo + dh, :],
                                      preferred_element_type=f32)

    ln = ln_ref[...]                                                     # (4, D)
    h = _layer_norm(h + attn_out, ln[0:1, :], ln[1:2, :])

    ff = jnp.maximum(jnp.dot(h, w1_ref[...], preferred_element_type=f32)
                     + b1_ref[...], 0.0)
    ff = jnp.dot(ff, w2_ref[...], preferred_element_type=f32) + b2_ref[...]
    h = _layer_norm(h + ff, ln[2:3, :], ln[3:4, :])

    o_ref[0] = h.astype(o_ref.dtype)


def _predictor_kernel(window,
                      h_ref, mask_ref,
                      pag_w_ref, pag_b_ref,
                      wq_ref, bq_ref, wk_ref, bk_ref,
                      tabk_ref, onehot_ref, bias_ref,
                      o_ref):
    f32 = jnp.float32
    h = h_ref[0]                                                         # (N, D)

    # PaG linear transform of the utterance embedding
    h2 = jnp.dot(h, pag_w_ref[...], preferred_element_type=f32) + pag_b_ref[...]

    # CausePredictor q/k
    q = jnp.dot(h2, wq_ref[...], preferred_element_type=f32) + bq_ref[...]
    k = jnp.dot(h2, wk_ref[...], preferred_element_type=f32) + bk_ref[...]
    D = q.shape[-1]
    scale = 1.0 / (D ** 0.5)

    content = lax.dot_general(q, k, (((1,), (1,)), ((), ())),
                              preferred_element_type=f32)                # (N, N)

    # relative-position score: q · table_k[idx]  ==  gather(q @ table_k^T, idx)
    qk_tab = lax.dot_general(q, tabk_ref[...], (((1,), (1,)), ((), ())),
                             preferred_element_type=f32)                 # (N, R)
    R = 2 * window + 1
    rel_score = jnp.zeros_like(content)
    for r in range(R):
        rel_score = rel_score + qk_tab[:, r:r + 1] * onehot_ref[r]       # (N,1)*(N,N)

    # bias term (rel_v · p) is batch-invariant: precomputed in glue as bias_ref
    score = (content + rel_score) * scale + bias_ref[...]

    m = mask_ref[0]
    o_ref[0] = jnp.where(m > 0, score, jnp.float32(-1e9)).astype(o_ref.dtype)


# ----------------------------------------------------------------------------
# Wrappers around the two fused kernels
# ----------------------------------------------------------------------------

def _full_spec(*shape):
    n = len(shape)
    return pl.BlockSpec(shape, lambda b, _n=n: (0,) * _n)


def encoder_forward(tok, am, adj_norm, params, wqkv, bqkv, ln, *, nhead):
    B, N, T, D = tok.shape
    Fd = params["w1"].shape[1]
    per_b = lambda *dims: pl.BlockSpec((1,) + dims, lambda b: (b,) + (0,) * len(dims))
    return pl.pallas_call(
        functools.partial(_encoder_kernel, nhead),
        out_shape=jax.ShapeDtypeStruct((B, N, D), jnp.float32),
        grid=(B,),
        in_specs=[
            pl.BlockSpec((1, N, T, D), lambda b: (b, 0, 0, 0)),          # tok
            per_b(N, T),                                                 # attn mask
            per_b(N, N),                                                 # adj_norm
            _full_spec(D, D), _full_spec(1, D),                          # proj
            _full_spec(D, D), _full_spec(D, D),                          # dag Ws, Wn
            _full_spec(D, 3 * D), _full_spec(1, 3 * D),                  # fused QKV
            _full_spec(D, D), _full_spec(1, D),                          # Wo, bo
            _full_spec(4, D),                                            # LN params
            _full_spec(D, Fd), _full_spec(1, Fd),                        # FF w1, b1
            _full_spec(Fd, D), _full_spec(1, D),                         # FF w2, b2
        ],
        out_specs=per_b(N, D),
        compiler_params=pltpu.CompilerParams(dimension_semantics=("parallel",)),
    )(tok, am, adj_norm,
      params["proj_w"], params["proj_b"],
      params["dag_ws"], params["dag_wn"],
      wqkv, bqkv,
      params["wo"], params["bo"], ln,
      params["w1"], params["b1"], params["w2"], params["b2"])


def predictor_forward(h, mask, params, table_k, rel_onehot, pair_bias, *, window):
    B, N, D = h.shape
    R = 2 * window + 1
    per_b = lambda *dims: pl.BlockSpec((1,) + dims, lambda b: (b,) + (0,) * len(dims))
    return pl.pallas_call(
        functools.partial(_predictor_kernel, window),
        out_shape=jax.ShapeDtypeStruct((B, N, N), jnp.float32),
        grid=(B,),
        in_specs=[
            per_b(N, D),                                                 # h
            per_b(N, N),                                                 # cause mask
            _full_spec(D, D), _full_spec(1, D),                          # PaG linear
            _full_spec(D, D), _full_spec(1, D),                          # clf wq
            _full_spec(D, D), _full_spec(1, D),                          # clf wk
            _full_spec(R, D),                                            # table_k
            _full_spec(R, N, N),                                         # band one-hot
            _full_spec(N, N),                                            # pair bias
        ],
        out_specs=per_b(N, N),
        compiler_params=pltpu.CompilerParams(dimension_semantics=("parallel",)),
    )(h, mask,
      params["pag_w"], params["pag_b"],
      params["clf_wq"], params["clf_bq"],
      params["clf_wk"], params["clf_bk"],
      table_k, rel_onehot, pair_bias)


# ----------------------------------------------------------------------------
# Full forward (glue: gathers, batch-invariant tables, parameter packing)
# ----------------------------------------------------------------------------

@functools.partial(jax.jit, static_argnames=("window", "nhead"))
def cause_dag_no_emotion_forward(params, input_ids, attention_mask, mask, adj, label,
                                 *, window, nhead):
    # TODO(synk): original UtterEncoder2 wraps a pretrained transformer (RoBERTa);
    # replaced by a deterministic token embedding (XLA gather) + masked mean pool.
    tok = params["tok_emb"][input_ids]                                   # (B, N, T, D)
    B, N, T, D = tok.shape

    adjf = adj.astype(jnp.float32)
    adj_norm = adjf / jnp.maximum(jnp.sum(adjf, axis=-1, keepdims=True), 1.0)

    # fused QKV weights + stacked layer-norm params (tiny, constant-folded under jit)
    wqkv = jnp.concatenate([params["wq"], params["wk"], params["wv"]], axis=1)
    bqkv = jnp.concatenate([params["bq"], params["bk"], params["bv"]], axis=1)
    ln = jnp.stack([params["ln1_g"], params["ln1_b"],
                    params["ln2_g"], params["ln2_b"]], axis=0)

    # TODO(synk): emotion-embedding branch ablated in the NoEmotion variant;
    # `emo_emb` / `label` are accepted but unused.
    h = encoder_forward(tok, attention_mask.astype(jnp.float32), adj_norm,
                        params, wqkv, bqkv, ln, nhead=nhead)

    # batch-invariant PaG relative-position machinery (computed once, in glue)
    table_k = params["coef_k"] @ params["bases_k"]                       # (R, D)
    table_v = params["coef_v"] @ params["bases_v"]                       # (R, D)
    R = 2 * window + 1
    idx = jnp.clip(jnp.arange(N)[None, :] - jnp.arange(N)[:, None],
                   -window, window) + window                             # (N, N)
    rel_onehot = (idx[None, :, :] == jnp.arange(R)[:, None, None]).astype(jnp.float32)
    pair_bias = (table_v @ params["clf_p"][0])[idx]                      # (N, N)

    logits = predictor_forward(h, mask.astype(jnp.float32), params,
                               table_k, rel_onehot, pair_bias, window=window)
    return logits


# ----------------------------------------------------------------------------
# Deterministic parameter init
# ----------------------------------------------------------------------------

def init_params(key, vocab, utter_dim, emotion_dim, ff_dim, nhead, window, num_bases,
                num_emotions=7):
    D = utter_dim
    ks = jax.random.split(key, 20)

    def w(k, shape, scale=0.05):
        return jax.random.normal(k, shape, jnp.float32) * scale

    return {
        "tok_emb": w(ks[0], (vocab, D)),
        "emo_emb": w(ks[1], (num_emotions, emotion_dim)),      # unused (NoEmotion)
        "proj_w": w(ks[2], (D, D)), "proj_b": jnp.zeros((1, D), jnp.float32),
        "dag_ws": w(ks[3], (D, D)), "dag_wn": w(ks[4], (D, D)),
        "wq": w(ks[5], (D, D)), "bq": jnp.zeros((1, D), jnp.float32),
        "wk": w(ks[6], (D, D)), "bk": jnp.zeros((1, D), jnp.float32),
        "wv": w(ks[7], (D, D)), "bv": jnp.zeros((1, D), jnp.float32),
        "wo": w(ks[8], (D, D)), "bo": jnp.zeros((1, D), jnp.float32),
        "ln1_g": jnp.ones((D,), jnp.float32), "ln1_b": jnp.zeros((D,), jnp.float32),
        "ln2_g": jnp.ones((D,), jnp.float32), "ln2_b": jnp.zeros((D,), jnp.float32),
        "w1": w(ks[9], (D, ff_dim)), "b1": jnp.zeros((1, ff_dim), jnp.float32),
        "w2": w(ks[10], (ff_dim, D)), "b2": jnp.zeros((1, D), jnp.float32),
        "coef_k": w(ks[11], (2 * window + 1, num_bases)),
        "bases_k": w(ks[12], (num_bases, D)),
        "coef_v": w(ks[13], (2 * window + 1, num_bases)),
        "bases_v": w(ks[14], (num_bases, D)),
        "pag_w": w(ks[15], (D, D)), "pag_b": jnp.zeros((1, D), jnp.float32),
        "clf_wq": w(ks[16], (D, D)), "clf_bq": jnp.zeros((1, D), jnp.float32),
        "clf_wk": w(ks[17], (D, D)), "clf_bk": jnp.zeros((1, D), jnp.float32),
        "clf_p": w(ks[18], (1, D)),
    }


# ----------------------------------------------------------------------------
# Main
# ----------------------------------------------------------------------------

if __name__ == "__main__":
    B, N, T = 2, 8, 12          # batch, utterances per conversation, tokens per utterance
    vocab = 50
    utter_dim = 32
    emotion_dim = 16
    ff_dim = 64
    nhead = 4
    window = 3
    num_bases = 2

    key = jax.random.PRNGKey(0)
    k_ids, k_msk, k_lab, k_par = jax.random.split(key, 4)

    input_ids = jax.random.randint(k_ids, (B, N, T), 1, vocab)
    attention_mask = (jax.random.uniform(k_msk, (B, N, T)) > 0.3).astype(jnp.float32)
    attention_mask = attention_mask.at[..., 0].set(1.0)

    # cause mask: candidate causes are the current or past utterances
    tri = (jnp.arange(N)[:, None] >= jnp.arange(N)[None, :]).astype(jnp.float32)
    mask = jnp.broadcast_to(tri, (B, N, N))

    # DAG adjacency: edges from up to `window` previous utterances
    d = jnp.arange(N)[:, None] - jnp.arange(N)[None, :]
    adj = jnp.broadcast_to(((d >= 1) & (d <= window)).astype(jnp.float32), (B, N, N))

    label = jax.random.randint(k_lab, (B, N), 0, 7)

    params = init_params(k_par, vocab, utter_dim, emotion_dim, ff_dim, nhead,
                         window, num_bases)

    logits = cause_dag_no_emotion_forward(
        params, input_ids, attention_mask, mask, adj, label,
        window=window, nhead=nhead)
    jax.block_until_ready(logits)

    assert logits.shape == (B, N, N), logits.shape
    assert logits.dtype == jnp.float32
    assert bool(jnp.all(jnp.isfinite(logits[mask > 0])))
    print("KERNEL_OK")
</pallas_src>

<mosaic_0001>
module attributes {stable_mosaic.version = 11 : i64} {
  func.func @_encoder_kernel(%arg0: i32, %arg1: memref<1x8x12x32xf32, #tpu.memory_space<vmem>>, %arg2: memref<1x8x12xf32, #tpu.memory_space<vmem>>, %arg3: memref<1x8x8xf32, #tpu.memory_space<vmem>>, %arg4: memref<32x32xf32, #tpu.memory_space<vmem>>, %arg5: memref<1x32xf32, #tpu.memory_space<vmem>>, %arg6: memref<32x32xf32, #tpu.memory_space<vmem>>, %arg7: memref<32x32xf32, #tpu.memory_space<vmem>>, %arg8: memref<32x96xf32, #tpu.memory_space<vmem>>, %arg9: memref<1x96xf32, #tpu.memory_space<vmem>>, %arg10: memref<32x32xf32, #tpu.memory_space<vmem>>, %arg11: memref<1x32xf32, #tpu.memory_space<vmem>>, %arg12: memref<4x32xf32, #tpu.memory_space<vmem>>, %arg13: memref<32x64xf32, #tpu.memory_space<vmem>>, %arg14: memref<1x64xf32, #tpu.memory_space<vmem>>, %arg15: memref<64x32xf32, #tpu.memory_space<vmem>>, %arg16: memref<1x32xf32, #tpu.memory_space<vmem>>, %arg17: memref<1x8x32xf32, #tpu.memory_space<vmem>>) attributes {dimension_semantics = [#tpu.dimension_semantics<parallel>], iteration_bounds = array<i64: 2>, scalar_prefetch = 0 : i64, scratch_operands = 0 : i64, tpu.core_type = #tpu.core_type<tc>, window_params = [{transform_indices = @transform_0, window_bounds = array<i64: 1, 8, 12, 32>}, {transform_indices = @transform_1, window_bounds = array<i64: 1, 8, 12>}, {transform_indices = @transform_2, window_bounds = array<i64: 1, 8, 8>}, {pipeline_mode = #tpu.pipeline_mode<synchronous>, transform_indices = @transform_3, window_bounds = array<i64: 32, 32>}, {pipeline_mode = #tpu.pipeline_mode<synchronous>, transform_indices = @transform_4, window_bounds = array<i64: 1, 32>}, {pipeline_mode = #tpu.pipeline_mode<synchronous>, transform_indices = @transform_5, window_bounds = array<i64: 32, 32>}, {pipeline_mode = #tpu.pipeline_mode<synchronous>, transform_indices = @transform_6, window_bounds = array<i64: 32, 32>}, {pipeline_mode = #tpu.pipeline_mode<synchronous>, transform_indices = @transform_7, window_bounds = array<i64: 32, 96>}, {pipeline_mode = #tpu.pipeline_mode<synchronous>, transform_indices = @transform_8, window_bounds = array<i64: 1, 96>}, {pipeline_mode = #tpu.pipeline_mode<synchronous>, transform_indices = @transform_9, window_bounds = array<i64: 32, 32>}, {pipeline_mode = #tpu.pipeline_mode<synchronous>, transform_indices = @transform_10, window_bounds = array<i64: 1, 32>}, {pipeline_mode = #tpu.pipeline_mode<synchronous>, transform_indices = @transform_11, window_bounds = array<i64: 4, 32>}, {pipeline_mode = #tpu.pipeline_mode<synchronous>, transform_indices = @transform_12, window_bounds = array<i64: 32, 64>}, {pipeline_mode = #tpu.pipeline_mode<synchronous>, transform_indices = @transform_13, window_bounds = array<i64: 1, 64>}, {pipeline_mode = #tpu.pipeline_mode<synchronous>, transform_indices = @transform_14, window_bounds = array<i64: 64, 32>}, {pipeline_mode = #tpu.pipeline_mode<synchronous>, transform_indices = @transform_15, window_bounds = array<i64: 1, 32>}, {transform_indices = @transform_16, window_bounds = array<i64: 1, 8, 32>}]} {
    %c0 = arith.constant 0 : index
    %c0_0 = arith.constant 0 : index
    %c0_1 = arith.constant 0 : index
    %c0_2 = arith.constant 0 : index
    %0 = vector.load %arg1[%c0, %c0_0, %c0_1, %c0_2] : memref<1x8x12x32xf32, #tpu.memory_space<vmem>>, vector<1x8x12x32xf32>
    %1 = vector.shape_cast %0 : vector<1x8x12x32xf32> to vector<8x12x32xf32>
    %c0_3 = arith.constant 0 : index
    %c0_4 = arith.constant 0 : index
    %c0_5 = arith.constant 0 : index
    %2 = vector.load %arg2[%c0_3, %c0_4, %c0_5] : memref<1x8x12xf32, #tpu.memory_space<vmem>>, vector<1x8x12xf32>
    %3 = vector.shape_cast %2 : vector<1x8x12xf32> to vector<8x12xf32>
    %4 = vector.shape_cast %3 : vector<8x12xf32> to vector<8x12x1xf32>
    %5 = vector.broadcast %4 : vector<8x12x1xf32> to vector<8x12x32xf32>
    %6 = arith.mulf %1, %5 : vector<8x12x32xf32>
    %cst = arith.constant dense<0.000000e+00> : vector<8x32xf32>
    %7 = vector.multi_reduction <add>, %6, %cst [1] : vector<8x12x32xf32> to vector<8x32xf32>
    %cst_6 = arith.constant dense<0.000000e+00> : vector<8xf32>
    %8 = vector.multi_reduction <add>, %3, %cst_6 [1] : vector<8x12xf32> to vector<8xf32>
    %9 = vector.shape_cast %8 : vector<8xf32> to vector<8x1xf32>
    %cst_7 = arith.constant 1.000000e+00 : f32
    %10 = vector.broadcast %cst_7 : f32 to vector<8x1xf32>
    %11 = arith.maximumf %9, %10 : vector<8x1xf32>
    %12 = vector.broadcast %11 : vector<8x1xf32> to vector<8x32xf32>
    %13 = arith.divf %7, %12 : vector<8x32xf32>
    %c0_8 = arith.constant 0 : index
    %c0_9 = arith.constant 0 : index
    %14 = vector.load %arg4[%c0_8, %c0_9] : memref<32x32xf32, #tpu.memory_space<vmem>>, vector<32x32xf32>
    %cst_10 = arith.constant dense<0.000000e+00> : vector<8x32xf32>
    %15 = tpu.matmul %13, %14, %cst_10 {dimension_numbers = #tpu.dot_dimension_numbers<[1], [0], [0], [1], [0, 0, 1, 1], [], []>} : vector<8x32xf32>, vector<32x32xf32>, vector<8x32xf32> -> vector<8x32xf32>
    %c0_11 = arith.constant 0 : index
    %c0_12 = arith.constant 0 : index
    %16 = vector.load %arg5[%c0_11, %c0_12] : memref<1x32xf32, #tpu.memory_space<vmem>>, vector<1x32xf32>
    %17 = vector.broadcast %16 : vector<1x32xf32> to vector<8x32xf32>
    %18 = arith.addf %15, %17 : vector<8x32xf32>
    %c0_13 = arith.constant 0 : index
    %c0_14 = arith.constant 0 : index
    %c0_15 = arith.constant 0 : index
    %19 = vector.load %arg3[%c0_13, %c0_14, %c0_15] : memref<1x8x8xf32, #tpu.memory_space<vmem>>, vector<1x8x8xf32>
    %20 = vector.shape_cast %19 : vector<1x8x8xf32> to vector<8x8xf32>
    %cst_16 = arith.constant dense<0.000000e+00> : vector<8x32xf32>
    %21 = tpu.matmul %20, %18, %cst_16 {dimension_numbers = #tpu.dot_dimension_numbers<[1], [0], [0], [1], [0, 0, 1, 1], [], []>} : vector<8x8xf32>, vector<8x32xf32>, vector<8x32xf32> -> vector<8x32xf32>
    %c0_17 = arith.constant 0 : index
    %c0_18 = arith.constant 0 : index
    %22 = vector.load %arg6[%c0_17, %c0_18] : memref<32x32xf32, #tpu.memory_space<vmem>>, vector<32x32xf32>
    %cst_19 = arith.constant dense<0.000000e+00> : vector<8x32xf32>
    %23 = tpu.matmul %18, %22, %cst_19 {dimension_numbers = #tpu.dot_dimension_numbers<[1], [0], [0], [1], [0, 0, 1, 1], [], []>} : vector<8x32xf32>, vector<32x32xf32>, vector<8x32xf32> -> vector<8x32xf32>
    %c0_20 = arith.constant 0 : index
    %c0_21 = arith.constant 0 : index
    %24 = vector.load %arg7[%c0_20, %c0_21] : memref<32x32xf32, #tpu.memory_space<vmem>>, vector<32x32xf32>
    %cst_22 = arith.constant dense<0.000000e+00> : vector<8x32xf32>
    %25 = tpu.matmul %21, %24, %cst_22 {dimension_numbers = #tpu.dot_dimension_numbers<[1], [0], [0], [1], [0, 0, 1, 1], [], []>} : vector<8x32xf32>, vector<32x32xf32>, vector<8x32xf32> -> vector<8x32xf32>
    %26 = arith.addf %23, %25 : vector<8x32xf32>
    %cst_23 = arith.constant 0.000000e+00 : f32
    %27 = vector.broadcast %cst_23 : f32 to vector<8x32xf32>
    %28 = arith.maximumf %26, %27 : vector<8x32xf32>
    %c0_24 = arith.constant 0 : index
    %c0_25 = arith.constant 0 : index
    %29 = vector.load %arg8[%c0_24, %c0_25] : memref<32x96xf32, #tpu.memory_space<vmem>>, vector<32x96xf32>
    %cst_26 = arith.constant dense<0.000000e+00> : vector<8x96xf32>
    %30 = tpu.matmul %28, %29, %cst_26 {dimension_numbers = #tpu.dot_dimension_numbers<[1], [0], [0], [1], [0, 0, 1, 1], [], []>} : vector<8x32xf32>, vector<32x96xf32>, vector<8x96xf32> -> vector<8x96xf32>
    %c0_27 = arith.constant 0 : index
    %c0_28 = arith.constant 0 : index
    %31 = vector.load %arg9[%c0_27, %c0_28] : memref<1x96xf32, #tpu.memory_space<vmem>>, vector<1x96xf32>
    %32 = vector.broadcast %31 : vector<1x96xf32> to vector<8x96xf32>
    %33 = arith.addf %30, %32 : vector<8x96xf32>
    %c0_29 = arith.constant 0 : index
    %c0_30 = arith.constant 0 : index
    %34 = vector.load %arg11[%c0_29, %c0_30] : memref<1x32xf32, #tpu.memory_space<vmem>>, vector<1x32xf32>
    %35 = vector.extract_strided_slice %33 {offsets = [0, 0], sizes = [8, 8], strides = [1, 1]} : vector<8x96xf32> to vector<8x8xf32>
    %36 = vector.extract_strided_slice %33 {offsets = [0, 32], sizes = [8, 8], strides = [1, 1]} : vector<8x96xf32> to vector<8x8xf32>
    %37 = vector.extract_strided_slice %33 {offsets = [0, 64], sizes = [8, 8], strides = [1, 1]} : vector<8x96xf32> to vector<8x8xf32>
    %cst_31 = arith.constant dense<0.000000e+00> : vector<8x8xf32>
    %38 = tpu.matmul %35, %36, %cst_31 {dimension_numbers = #tpu.dot_dimension_numbers<[1], [1], [0], [0], [0, 0, 1, 0], [], []>} : vector<8x8xf32>, vector<8x8xf32>, vector<8x8xf32> -> vector<8x8xf32>
    %cst_32 = arith.constant 0.353553385 : f32
    %39 = vector.broadcast %cst_32 : f32 to vector<8x8xf32>
    %40 = arith.mulf %38, %39 : vector<8x8xf32>
    %cst_33 = arith.constant dense<0xFF800000> : vector<8xf32>
    %41 = vector.multi_reduction <maximumf>, %40, %cst_33 [1] : vector<8x8xf32> to vector<8xf32>
    %42 = vector.shape_cast %41 : vector<8xf32> to vector<8x1xf32>
    %43 = vector.broadcast %42 : vector<8x1xf32> to vector<8x8xf32>
    %44 = arith.subf %40, %43 : vector<8x8xf32>
    %45 = math.exp %44 : vector<8x8xf32>
    %cst_34 = arith.constant dense<0.000000e+00> : vector<8xf32>
    %46 = vector.multi_reduction <add>, %45, %cst_34 [1] : vector<8x8xf32> to vector<8xf32>
    %47 = vector.shape_cast %46 : vector<8xf32> to vector<8x1xf32>
    %48 = tpu.reciprocal %47 {approx = true} : vector<8x1xf32> -> vector<8x1xf32>
    %49 = vector.broadcast %48 : vector<8x1xf32> to vector<8x8xf32>
    %50 = arith.mulf %45, %49 : vector<8x8xf32>
    %cst_35 = arith.constant dense<0.000000e+00> : vector<8x8xf32>
    %51 = tpu.matmul %50, %37, %cst_35 {dimension_numbers = #tpu.dot_dimension_numbers<[1], [0], [0], [1], [0, 0, 1, 1], [], []>} : vector<8x8xf32>, vector<8x8xf32>, vector<8x8xf32> -> vector<8x8xf32>
    %c0_36 = arith.constant 0 : index
    %c0_37 = arith.constant 0 : index
    %52 = vector.load %arg10[%c0_36, %c0_37] : memref<32x32xf32, #tpu.memory_space<vmem>>, vector<8x32xf32>
    %cst_38 = arith.constant dense<0.000000e+00> : vector<8x32xf32>
    %53 = tpu.matmul %51, %52, %cst_38 {dimension_numbers = #tpu.dot_dimension_numbers<[1], [0], [0], [1], [0, 0, 1, 1], [], []>} : vector<8x8xf32>, vector<8x32xf32>, vector<8x32xf32> -> vector<8x32xf32>
    %54 = vector.broadcast %34 : vector<1x32xf32> to vector<8x32xf32>
    %55 = arith.addf %54, %53 : vector<8x32xf32>
    %56 = vector.extract_strided_slice %33 {offsets = [0, 8], sizes = [8, 8], strides = [1, 1]} : vector<8x96xf32> to vector<8x8xf32>
    %57 = vector.extract_strided_slice %33 {offsets = [0, 40], sizes = [8, 8], strides = [1, 1]} : vector<8x96xf32> to vector<8x8xf32>
    %58 = vector.extract_strided_slice %33 {offsets = [0, 72], sizes = [8, 8], strides = [1, 1]} : vector<8x96xf32> to vector<8x8xf32>
    %cst_39 = arith.constant dense<0.000000e+00> : vector<8x8xf32>
    %59 = tpu.matmul %56, %57, %cst_39 {dimension_numbers = #tpu.dot_dimension_numbers<[1], [1], [0], [0], [0, 0, 1, 0], [], []>} : vector<8x8xf32>, vector<8x8xf32>, vector<8x8xf32> -> vector<8x8xf32>
    %cst_40 = arith.constant 0.353553385 : f32
    %60 = vector.broadcast %cst_40 : f32 to vector<8x8xf32>
    %61 = arith.mulf %59, %60 : vector<8x8xf32>
    %cst_41 = arith.constant dense<0xFF800000> : vector<8xf32>
    %62 = vector.multi_reduction <maximumf>, %61, %cst_41 [1] : vector<8x8xf32> to vector<8xf32>
    %63 = vector.shape_cast %62 : vector<8xf32> to vector<8x1xf32>
    %64 = vector.broadcast %63 : vector<8x1xf32> to vector<8x8xf32>
    %65 = arith.subf %61, %64 : vector<8x8xf32>
    %66 = math.exp %65 : vector<8x8xf32>
    %cst_42 = arith.constant dense<0.000000e+00> : vector<8xf32>
    %67 = vector.multi_reduction <add>, %66, %cst_42 [1] : vector<8x8xf32> to vector<8xf32>
    %68 = vector.shape_cast %67 : vector<8xf32> to vector<8x1xf32>
    %69 = tpu.reciprocal %68 {approx = true} : vector<8x1xf32> -> vector<8x1xf32>
    %70 = vector.broadcast %69 : vector<8x1xf32> to vector<8x8xf32>
    %71 = arith.mulf %66, %70 : vector<8x8xf32>
    %cst_43 = arith.constant dense<0.000000e+00> : vector<8x8xf32>
    %72 = tpu.matmul %71, %58, %cst_43 {dimension_numbers = #tpu.dot_dimension_numbers<[1], [0], [0], [1], [0, 0, 1, 1], [], []>} : vector<8x8xf32>, vector<8x8xf32>, vector<8x8xf32> -> vector<8x8xf32>
    %c8 = arith.constant 8 : index
    %c0_44 = arith.constant 0 : index
    %73 = vector.load %arg10[%c8, %c0_44] : memref<32x32xf32, #tpu.memory_space<vmem>>, vector<8x32xf32>
    %cst_45 = arith.constant dense<0.000000e+00> : vector<8x32xf32>
    %74 = tpu.matmul %72, %73, %cst_45 {dimension_numbers = #tpu.dot_dimension_numbers<[1], [0], [0], [1], [0, 0, 1, 1], [], []>} : vector<8x8xf32>, vector<8x32xf32>, vector<8x32xf32> -> vector<8x32xf32>
    %75 = arith.addf %55, %74 : vector<8x32xf32>
    %76 = vector.extract_strided_slice %33 {offsets = [0, 16], sizes = [8, 8], strides = [1, 1]} : vector<8x96xf32> to vector<8x8xf32>
    %77 = vector.extract_strided_slice %33 {offsets = [0, 48], sizes = [8, 8], strides = [1, 1]} : vector<8x96xf32> to vector<8x8xf32>
    %78 = vector.extract_strided_slice %33 {offsets = [0, 80], sizes = [8, 8], strides = [1, 1]} : vector<8x96xf32> to vector<8x8xf32>
    %cst_46 = arith.constant dense<0.000000e+00> : vector<8x8xf32>
    %79 = tpu.matmul %76, %77, %cst_46 {dimension_numbers = #tpu.dot_dimension_numbers<[1], [1], [0], [0], [0, 0, 1, 0], [], []>} : vector<8x8xf32>, vector<8x8xf32>, vector<8x8xf32> -> vector<8x8xf32>
    %cst_47 = arith.constant 0.353553385 : f32
    %80 = vector.broadcast %cst_47 : f32 to vector<8x8xf32>
    %81 = arith.mulf %79, %80 : vector<8x8xf32>
    %cst_48 = arith.constant dense<0xFF800000> : vector<8xf32>
    %82 = vector.multi_reduction <maximumf>, %81, %cst_48 [1] : vector<8x8xf32> to vector<8xf32>
    %83 = vector.shape_cast %82 : vector<8xf32> to vector<8x1xf32>
    %84 = vector.broadcast %83 : vector<8x1xf32> to vector<8x8xf32>
    %85 = arith.subf %81, %84 : vector<8x8xf32>
    %86 = math.exp %85 : vector<8x8xf32>
    %cst_49 = arith.constant dense<0.000000e+00> : vector<8xf32>
    %87 = vector.multi_reduction <add>, %86, %cst_49 [1] : vector<8x8xf32> to vector<8xf32>
    %88 = vector.shape_cast %87 : vector<8xf32> to vector<8x1xf32>
    %89 = tpu.reciprocal %88 {approx = true} : vector<8x1xf32> -> vector<8x1xf32>
    %90 = vector.broadcast %89 : vector<8x1xf32> to vector<8x8xf32>
    %91 = arith.mulf %86, %90 : vector<8x8xf32>
    %cst_50 = arith.constant dense<0.000000e+00> : vector<8x8xf32>
    %92 = tpu.matmul %91, %78, %cst_50 {dimension_numbers = #tpu.dot_dimension_numbers<[1], [0], [0], [1], [0, 0, 1, 1], [], []>} : vector<8x8xf32>, vector<8x8xf32>, vector<8x8xf32> -> vector<8x8xf32>
    %c16 = arith.constant 16 : index
    %c0_51 = arith.constant 0 : index
    %93 = vector.load %arg10[%c16, %c0_51] : memref<32x32xf32, #tpu.memory_space<vmem>>, vector<8x32xf32>
    %cst_52 = arith.constant dense<0.000000e+00> : vector<8x32xf32>
    %94 = tpu.matmul %92, %93, %cst_52 {dimension_numbers = #tpu.dot_dimension_numbers<[1], [0], [0], [1], [0, 0, 1, 1], [], []>} : vector<8x8xf32>, vector<8x32xf32>, vector<8x32xf32> -> vector<8x32xf32>
    %95 = arith.addf %75, %94 : vector<8x32xf32>
    %96 = vector.extract_strided_slice %33 {offsets = [0, 24], sizes = [8, 8], strides = [1, 1]} : vector<8x96xf32> to vector<8x8xf32>
    %97 = vector.extract_strided_slice %33 {offsets = [0, 56], sizes = [8, 8], strides = [1, 1]} : vector<8x96xf32> to vector<8x8xf32>
    %98 = vector.extract_strided_slice %33 {offsets = [0, 88], sizes = [8, 8], strides = [1, 1]} : vector<8x96xf32> to vector<8x8xf32>
    %cst_53 = arith.constant dense<0.000000e+00> : vector<8x8xf32>
    %99 = tpu.matmul %96, %97, %cst_53 {dimension_numbers = #tpu.dot_dimension_numbers<[1], [1], [0], [0], [0, 0, 1, 0], [], []>} : vector<8x8xf32>, vector<8x8xf32>, vector<8x8xf32> -> vector<8x8xf32>
    %cst_54 = arith.constant 0.353553385 : f32
    %100 = vector.broadcast %cst_54 : f32 to vector<8x8xf32>
    %101 = arith.mulf %99, %100 : vector<8x8xf32>
    %cst_55 = arith.constant dense<0xFF800000> : vector<8xf32>
    %102 = vector.multi_reduction <maximumf>, %101, %cst_55 [1] : vector<8x8xf32> to vector<8xf32>
    %103 = vector.shape_cast %102 : vector<8xf32> to vector<8x1xf32>
    %104 = vector.broadcast %103 : vector<8x1xf32> to vector<8x8xf32>
    %105 = arith.subf %101, %104 : vector<8x8xf32>
    %106 = math.exp %105 : vector<8x8xf32>
    %cst_56 = arith.constant dense<0.000000e+00> : vector<8xf32>
    %107 = vector.multi_reduction <add>, %106, %cst_56 [1] : vector<8x8xf32> to vector<8xf32>
    %108 = vector.shape_cast %107 : vector<8xf32> to vector<8x1xf32>
    %109 = tpu.reciprocal %108 {approx = true} : vector<8x1xf32> -> vector<8x1xf32>
    %110 = vector.broadcast %109 : vector<8x1xf32> to vector<8x8xf32>
    %111 = arith.mulf %106, %110 : vector<8x8xf32>
    %cst_57 = arith.constant dense<0.000000e+00> : vector<8x8xf32>
    %112 = tpu.matmul %111, %98, %cst_57 {dimension_numbers = #tpu.dot_dimension_numbers<[1], [0], [0], [1], [0, 0, 1, 1], [], []>} : vector<8x8xf32>, vector<8x8xf32>, vector<8x8xf32> -> vector<8x8xf32>
    %c24 = arith.constant 24 : index
    %c0_58 = arith.constant 0 : index
    %113 = vector.load %arg10[%c24, %c0_58] : memref<32x32xf32, #tpu.memory_space<vmem>>, vector<8x32xf32>
    %cst_59 = arith.constant dense<0.000000e+00> : vector<8x32xf32>
    %114 = tpu.matmul %112, %113, %cst_59 {dimension_numbers = #tpu.dot_dimension_numbers<[1], [0], [0], [1], [0, 0, 1, 1], [], []>} : vector<8x8xf32>, vector<8x32xf32>, vector<8x32xf32> -> vector<8x32xf32>
    %115 = arith.addf %95, %114 : vector<8x32xf32>
    %c0_60 = arith.constant 0 : index
    %c0_61 = arith.constant 0 : index
    %116 = vector.load %arg12[%c0_60, %c0_61] : memref<4x32xf32, #tpu.memory_space<vmem>>, vector<4x32xf32>
    %117 = arith.addf %28, %115 : vector<8x32xf32>
    %118 = vector.extract_strided_slice %116 {offsets = [0, 0], sizes = [1, 32], strides = [1, 1]} : vector<4x32xf32> to vector<1x32xf32>
    %119 = vector.extract_strided_slice %116 {offsets = [1, 0], sizes = [1, 32], strides = [1, 1]} : vector<4x32xf32> to vector<1x32xf32>
    %cst_62 = arith.constant dense<0.000000e+00> : vector<8xf32>
    %120 = vector.multi_reduction <add>, %117, %cst_62 [1] : vector<8x32xf32> to vector<8xf32>
    %121 = vector.shape_cast %120 : vector<8xf32> to vector<8x1xf32>
    %cst_63 = arith.constant 3.200000e+01 : f32
    %122 = vector.broadcast %cst_63 : f32 to vector<8x1xf32>
    %123 = arith.divf %121, %122 : vector<8x1xf32>
    %124 = vector.broadcast %123 : vector<8x1xf32> to vector<8x32xf32>
    %125 = arith.subf %117, %124 : vector<8x32xf32>
    %126 = arith.mulf %125, %125 : vector<8x32xf32>
    %cst_64 = arith.constant dense<0.000000e+00> : vector<8xf32>
    %127 = vector.multi_reduction <add>, %126, %cst_64 [1] : vector<8x32xf32> to vector<8xf32>
    %128 = vector.shape_cast %127 : vector<8xf32> to vector<8x1xf32>
    %cst_65 = arith.constant 3.200000e+01 : f32
    %129 = vector.broadcast %cst_65 : f32 to vector<8x1xf32>
    %130 = arith.divf %128, %129 : vector<8x1xf32>
    %131 = vector.broadcast %123 : vector<8x1xf32> to vector<8x32xf32>
    %132 = arith.subf %117, %131 : vector<8x32xf32>
    %cst_66 = arith.constant 9.99999974E-6 : f32
    %133 = vector.broadcast %cst_66 : f32 to vector<8x1xf32>
    %134 = arith.addf %130, %133 : vector<8x1xf32>
    %135 = math.rsqrt %134 : vector<8x1xf32>
    %136 = vector.broadcast %135 : vector<8x1xf32> to vector<8x32xf32>
    %137 = arith.mulf %132, %136 : vector<8x32xf32>
    %138 = vector.broadcast %118 : vector<1x32xf32> to vector<8x32xf32>
    %139 = arith.mulf %137, %138 : vector<8x32xf32>
    %140 = vector.broadcast %119 : vector<1x32xf32> to vector<8x32xf32>
    %141 = arith.addf %139, %140 : vector<8x32xf32>
    %c0_67 = arith.constant 0 : index
    %c0_68 = arith.constant 0 : index
    %142 = vector.load %arg13[%c0_67, %c0_68] : memref<32x64xf32, #tpu.memory_space<vmem>>, vector<32x64xf32>
    %cst_69 = arith.constant dense<0.000000e+00> : vector<8x64xf32>
    %143 = tpu.matmul %141, %142, %cst_69 {dimension_numbers = #tpu.dot_dimension_numbers<[1], [0], [0], [1], [0, 0, 1, 1], [], []>} : vector<8x32xf32>, vector<32x64xf32>, vector<8x64xf32> -> vector<8x64xf32>
    %c0_70 = arith.constant 0 : index
    %c0_71 = arith.constant 0 : index
    %144 = vector.load %arg14[%c0_70, %c0_71] : memref<1x64xf32, #tpu.memory_space<vmem>>, vector<1x64xf32>
    %145 = vector.broadcast %144 : vector<1x64xf32> to vector<8x64xf32>
    %146 = arith.addf %143, %145 : vector<8x64xf32>
    %cst_72 = arith.constant 0.000000e+00 : f32
    %147 = vector.broadcast %cst_72 : f32 to vector<8x64xf32>
    %148 = arith.maximumf %146, %147 : vector<8x64xf32>
    %c0_73 = arith.constant 0 : index
    %c0_74 = arith.constant 0 : index
    %149 = vector.load %arg15[%c0_73, %c0_74] : memref<64x32xf32, #tpu.memory_space<vmem>>, vector<64x32xf32>
    %cst_75 = arith.constant dense<0.000000e+00> : vector<8x32xf32>
    %150 = tpu.matmul %148, %149, %cst_75 {dimension_numbers = #tpu.dot_dimension_numbers<[1], [0], [0], [1], [0, 0, 1, 1], [], []>} : vector<8x64xf32>, vector<64x32xf32>, vector<8x32xf32> -> vector<8x32xf32>
    %c0_76 = arith.constant 0 : index
    %c0_77 = arith.constant 0 : index
    %151 = vector.load %arg16[%c0_76, %c0_77] : memref<1x32xf32, #tpu.memory_space<vmem>>, vector<1x32xf32>
    %152 = vector.broadcast %151 : vector<1x32xf32> to vector<8x32xf32>
    %153 = arith.addf %150, %152 : vector<8x32xf32>
    %154 = arith.addf %141, %153 : vector<8x32xf32>
    %155 = vector.extract_strided_slice %116 {offsets = [2, 0], sizes = [1, 32], strides = [1, 1]} : vector<4x32xf32> to vector<1x32xf32>
    %156 = vector.extract_strided_slice %116 {offsets = [3, 0], sizes = [1, 32], strides = [1, 1]} : vector<4x32xf32> to vector<1x32xf32>
    %cst_78 = arith.constant dense<0.000000e+00> : vector<8xf32>
    %157 = vector.multi_reduction <add>, %154, %cst_78 [1] : vector<8x32xf32> to vector<8xf32>
    %158 = vector.shape_cast %157 : vector<8xf32> to vector<8x1xf32>
    %cst_79 = arith.constant 3.200000e+01 : f32
    %159 = vector.broadcast %cst_79 : f32 to vector<8x1xf32>
    %160 = arith.divf %158, %159 : vector<8x1xf32>
    %161 = vector.broadcast %160 : vector<8x1xf32> to vector<8x32xf32>
    %162 = arith.subf %154, %161 : vector<8x32xf32>
    %163 = arith.mulf %162, %162 : vector<8x32xf32>
    %cst_80 = arith.constant dense<0.000000e+00> : vector<8xf32>
    %164 = vector.multi_reduction <add>, %163, %cst_80 [1] : vector<8x32xf32> to vector<8xf32>
    %165 = vector.shape_cast %164 : vector<8xf32> to vector<8x1xf32>
    %cst_81 = arith.constant 3.200000e+01 : f32
    %166 = vector.broadcast %cst_81 : f32 to vector<8x1xf32>
    %167 = arith.divf %165, %166 : vector<8x1xf32>
    %168 = vector.broadcast %160 : vector<8x1xf32> to vector<8x32xf32>
    %169 = arith.subf %154, %168 : vector<8x32xf32>
    %cst_82 = arith.constant 9.99999974E-6 : f32
    %170 = vector.broadcast %cst_82 : f32 to vector<8x1xf32>
    %171 = arith.addf %167, %170 : vector<8x1xf32>
    %172 = math.rsqrt %171 : vector<8x1xf32>
    %173 = vector.broadcast %172 : vector<8x1xf32> to vector<8x32xf32>
    %174 = arith.mulf %169, %173 : vector<8x32xf32>
    %175 = vector.broadcast %155 : vector<1x32xf32> to vector<8x32xf32>
    %176 = arith.mulf %174, %175 : vector<8x32xf32>
    %177 = vector.broadcast %156 : vector<1x32xf32> to vector<8x32xf32>
    %178 = arith.addf %176, %177 : vector<8x32xf32>
    %c0_83 = arith.constant 0 : index
    %c0_84 = arith.constant 0 : index
    %c0_85 = arith.constant 0 : index
    %179 = vector.load %arg17[%c0_83, %c0_84, %c0_85] : memref<1x8x32xf32, #tpu.memory_space<vmem>>, vector<1x8x32xf32>
    %180 = vector.shape_cast %179 : vector<1x8x32xf32> to vector<8x32xf32>
    %181 = vector.shape_cast %178 : vector<8x32xf32> to vector<1x8x32xf32>
    tpu.vector_store %arg17[%c0_83, %c0_84, %c0_85], %181 {strides = array<i32>} : memref<1x8x32xf32, #tpu.memory_space<vmem>>, vector<1x8x32xf32>,
    return
  }
  func.func @transform_0(%arg0: i32) -> (i32, i32, i32, i32) {
    %c0_i32 = arith.constant 0 : i32
    %c0_i32_0 = arith.constant 0 : i32
    %c0_i32_1 = arith.constant 0 : i32
    %c0_i32_2 = arith.constant 0 : i32
    return %arg0, %c0_i32, %c0_i32_0, %c0_i32_1 : i32, i32, i32, i32
  }
  func.func @transform_1(%arg0: i32) -> (i32, i32, i32) {
    %c0_i32 = arith.constant 0 : i32
    %c0_i32_0 = arith.constant 0 : i32
    %c0_i32_1 = arith.constant 0 : i32
    return %arg0, %c0_i32, %c0_i32_0 : i32, i32, i32
  }
  func.func @transform_2(%arg0: i32) -> (i32, i32, i32) {
    %c0_i32 = arith.constant 0 : i32
    %c0_i32_0 = arith.constant 0 : i32
    %c0_i32_1 = arith.constant 0 : i32
    return %arg0, %c0_i32, %c0_i32_0 : i32, i32, i32
  }
  func.func @transform_3(%arg0: i32) -> (i32, i32) {
    %c0_i32 = arith.constant 0 : i32
    %c0_i32_0 = arith.constant 0 : i32
    %c0_i32_1 = arith.constant 0 : i32
    return %c0_i32, %c0_i32_0 : i32, i32
  }
  func.func @transform_4(%arg0: i32) -> (i32, i32) {
    %c0_i32 = arith.constant 0 : i32
    %c0_i32_0 = arith.constant 0 : i32
    %c0_i32_1 = arith.constant 0 : i32
    return %c0_i32, %c0_i32_0 : i32, i32
  }
  func.func @transform_5(%arg0: i32) -> (i32, i32) {
    %c0_i32 = arith.constant 0 : i32
    %c0_i32_0 = arith.constant 0 : i32
    %c0_i32_1 = arith.constant 0 : i32
    return %c0_i32, %c0_i32_0 : i32, i32
  }
  func.func @transform_6(%arg0: i32) -> (i32, i32) {
    %c0_i32 = arith.constant 0 : i32
    %c0_i32_0 = arith.constant 0 : i32
    %c0_i32_1 = arith.constant 0 : i32
    return %c0_i32, %c0_i32_0 : i32, i32
  }
  func.func @transform_7(%arg0: i32) -> (i32, i32) {
    %c0_i32 = arith.constant 0 : i32
    %c0_i32_0 = arith.constant 0 : i32
    %c0_i32_1 = arith.constant 0 : i32
    return %c0_i32, %c0_i32_0 : i32, i32
  }
  func.func @transform_8(%arg0: i32) -> (i32, i32) {
    %c0_i32 = arith.constant 0 : i32
    %c0_i32_0 = arith.constant 0 : i32
    %c0_i32_1 = arith.constant 0 : i32
    return %c0_i32, %c0_i32_0 : i32, i32
  }
  func.func @transform_9(%arg0: i32) -> (i32, i32) {
    %c0_i32 = arith.constant 0 : i32
    %c0_i32_0 = arith.constant 0 : i32
    %c0_i32_1 = arith.constant 0 : i32
    return %c0_i32, %c0_i32_0 : i32, i32
  }
  func.func @transform_10(%arg0: i32) -> (i32, i32) {
    %c0_i32 = arith.constant 0 : i32
    %c0_i32_0 = arith.constant 0 : i32
    %c0_i32_1 = arith.constant 0 : i32
    return %c0_i32, %c0_i32_0 : i32, i32
  }
  func.func @transform_11(%arg0: i32) -> (i32, i32) {
    %c0_i32 = arith.constant 0 : i32
    %c0_i32_0 = arith.constant 0 : i32
    %c0_i32_1 = arith.constant 0 : i32
    return %c0_i32, %c0_i32_0 : i32, i32
  }
  func.func @transform_12(%arg0: i32) -> (i32, i32) {
    %c0_i32 = arith.constant 0 : i32
    %c0_i32_0 = arith.constant 0 : i32
    %c0_i32_1 = arith.constant 0 : i32
    return %c0_i32, %c0_i32_0 : i32, i32
  }
  func.func @transform_13(%arg0: i32) -> (i32, i32) {
    %c0_i32 = arith.constant 0 : i32
    %c0_i32_0 = arith.constant 0 : i32
    %c0_i32_1 = arith.constant 0 : i32
    return %c0_i32, %c0_i32_0 : i32, i32
  }
  func.func @transform_14(%arg0: i32) -> (i32, i32) {
    %c0_i32 = arith.constant 0 : i32
    %c0_i32_0 = arith.constant 0 : i32
    %c0_i32_1 = arith.constant 0 : i32
    return %c0_i32, %c0_i32_0 : i32, i32
  }
  func.func @transform_15(%arg0: i32) -> (i32, i32) {
    %c0_i32 = arith.constant 0 : i32
    %c0_i32_0 = arith.constant 0 : i32
    %c0_i32_1 = arith.constant 0 : i32
    return %c0_i32, %c0_i32_0 : i32, i32
  }
  func.func @transform_16(%arg0: i32) -> (i32, i32, i32) {
    %c0_i32 = arith.constant 0 : i32
    %c0_i32_0 = arith.constant 0 : i32
    %c0_i32_1 = arith.constant 0 : i32
    return %arg0, %c0_i32, %c0_i32_0 : i32, i32, i32
  }
}

module attributes {stable_mosaic.version = 11 : i64} {
  func.func @_predictor_kernel(%arg0: i32, %arg1: memref<1x8x32xf32, #tpu.memory_space<vmem>>, %arg2: memref<1x8x8xf32, #tpu.memory_space<vmem>>, %arg3: memref<32x32xf32, #tpu.memory_space<vmem>>, %arg4: memref<1x32xf32, #tpu.memory_space<vmem>>, %arg5: memref<32x32xf32, #tpu.memory_space<vmem>>, %arg6: memref<1x32xf32, #tpu.memory_space<vmem>>, %arg7: memref<32x32xf32, #tpu.memory_space<vmem>>, %arg8: memref<1x32xf32, #tpu.memory_space<vmem>>, %arg9: memref<7x32xf32, #tpu.memory_space<vmem>>, %arg10: memref<7x8x8xf32, #tpu.memory_space<vmem>>, %arg11: memref<8x8xf32, #tpu.memory_space<vmem>>, %arg12: memref<1x8x8xf32, #tpu.memory_space<vmem>>) attributes {dimension_semantics = [#tpu.dimension_semantics<parallel>], iteration_bounds = array<i64: 2>, scalar_prefetch = 0 : i64, scratch_operands = 0 : i64, tpu.core_type = #tpu.core_type<tc>, window_params = [{transform_indices = @transform_0, window_bounds = array<i64: 1, 8, 32>}, {transform_indices = @transform_1, window_bounds = array<i64: 1, 8, 8>}, {pipeline_mode = #tpu.pipeline_mode<synchronous>, transform_indices = @transform_2, window_bounds = array<i64: 32, 32>}, {pipeline_mode = #tpu.pipeline_mode<synchronous>, transform_indices = @transform_3, window_bounds = array<i64: 1, 32>}, {pipeline_mode = #tpu.pipeline_mode<synchronous>, transform_indices = @transform_4, window_bounds = array<i64: 32, 32>}, {pipeline_mode = #tpu.pipeline_mode<synchronous>, transform_indices = @transform_5, window_bounds = array<i64: 1, 32>}, {pipeline_mode = #tpu.pipeline_mode<synchronous>, transform_indices = @transform_6, window_bounds = array<i64: 32, 32>}, {pipeline_mode = #tpu.pipeline_mode<synchronous>, transform_indices = @transform_7, window_bounds = array<i64: 1, 32>}, {pipeline_mode = #tpu.pipeline_mode<synchronous>, transform_indices = @transform_8, window_bounds = array<i64: 7, 32>}, {pipeline_mode = #tpu.pipeline_mode<synchronous>, transform_indices = @transform_9, window_bounds = array<i64: 7, 8, 8>}, {pipeline_mode = #tpu.pipeline_mode<synchronous>, transform_indices = @transform_10, window_bounds = array<i64: 8, 8>}, {transform_indices = @transform_11, window_bounds = array<i64: 1, 8, 8>}]} {
    %c0 = arith.constant 0 : index
    %c0_0 = arith.constant 0 : index
    %c0_1 = arith.constant 0 : index
    %0 = vector.load %arg1[%c0, %c0_0, %c0_1] : memref<1x8x32xf32, #tpu.memory_space<vmem>>, vector<1x8x32xf32>
    %1 = vector.shape_cast %0 : vector<1x8x32xf32> to vector<8x32xf32>
    %c0_2 = arith.constant 0 : index
    %c0_3 = arith.constant 0 : index
    %2 = vector.load %arg3[%c0_2, %c0_3] : memref<32x32xf32, #tpu.memory_space<vmem>>, vector<32x32xf32>
    %cst = arith.constant dense<0.000000e+00> : vector<8x32xf32>
    %3 = tpu.matmul %1, %2, %cst {dimension_numbers = #tpu.dot_dimension_numbers<[1], [0], [0], [1], [0, 0, 1, 1], [], []>} : vector<8x32xf32>, vector<32x32xf32>, vector<8x32xf32> -> vector<8x32xf32>
    %c0_4 = arith.constant 0 : index
    %c0_5 = arith.constant 0 : index
    %4 = vector.load %arg4[%c0_4, %c0_5] : memref<1x32xf32, #tpu.memory_space<vmem>>, vector<1x32xf32>
    %5 = vector.broadcast %4 : vector<1x32xf32> to vector<8x32xf32>
    %6 = arith.addf %3, %5 : vector<8x32xf32>
    %c0_6 = arith.constant 0 : index
    %c0_7 = arith.constant 0 : index
    %7 = vector.load %arg5[%c0_6, %c0_7] : memref<32x32xf32, #tpu.memory_space<vmem>>, vector<32x32xf32>
    %cst_8 = arith.constant dense<0.000000e+00> : vector<8x32xf32>
    %8 = tpu.matmul %6, %7, %cst_8 {dimension_numbers = #tpu.dot_dimension_numbers<[1], [0], [0], [1], [0, 0, 1, 1], [], []>} : vector<8x32xf32>, vector<32x32xf32>, vector<8x32xf32> -> vector<8x32xf32>
    %c0_9 = arith.constant 0 : index
    %c0_10 = arith.constant 0 : index
    %9 = vector.load %arg6[%c0_9, %c0_10] : memref<1x32xf32, #tpu.memory_space<vmem>>, vector<1x32xf32>
    %10 = vector.broadcast %9 : vector<1x32xf32> to vector<8x32xf32>
    %11 = arith.addf %8, %10 : vector<8x32xf32>
    %c0_11 = arith.constant 0 : index
    %c0_12 = arith.constant 0 : index
    %12 = vector.load %arg7[%c0_11, %c0_12] : memref<32x32xf32, #tpu.memory_space<vmem>>, vector<32x32xf32>
    %cst_13 = arith.constant dense<0.000000e+00> : vector<8x32xf32>
    %13 = tpu.matmul %6, %12, %cst_13 {dimension_numbers = #tpu.dot_dimension_numbers<[1], [0], [0], [1], [0, 0, 1, 1], [], []>} : vector<8x32xf32>, vector<32x32xf32>, vector<8x32xf32> -> vector<8x32xf32>
    %c0_14 = arith.constant 0 : index
    %c0_15 = arith.constant 0 : index
    %14 = vector.load %arg8[%c0_14, %c0_15] : memref<1x32xf32, #tpu.memory_space<vmem>>, vector<1x32xf32>
    %15 = vector.broadcast %14 : vector<1x32xf32> to vector<8x32xf32>
    %16 = arith.addf %13, %15 : vector<8x32xf32>
    %cst_16 = arith.constant dense<0.000000e+00> : vector<8x8xf32>
    %17 = tpu.matmul %11, %16, %cst_16 {dimension_numbers = #tpu.dot_dimension_numbers<[1], [1], [0], [0], [0, 0, 1, 0], [], []>} : vector<8x32xf32>, vector<8x32xf32>, vector<8x8xf32> -> vector<8x8xf32>
    %c0_17 = arith.constant 0 : index
    %c0_18 = arith.constant 0 : index
    %18 = vector.load %arg9[%c0_17, %c0_18] : memref<7x32xf32, #tpu.memory_space<vmem>>, vector<7x32xf32>
    %cst_19 = arith.constant dense<0.000000e+00> : vector<8x7xf32>
    %19 = tpu.matmul %11, %18, %cst_19 {dimension_numbers = #tpu.dot_dimension_numbers<[1], [1], [0], [0], [0, 0, 1, 0], [], []>} : vector<8x32xf32>, vector<7x32xf32>, vector<8x7xf32> -> vector<8x7xf32>
    %cst_20 = arith.constant 0.000000e+00 : f32
    %20 = vector.broadcast %cst_20 : f32 to vector<8x8xf32>
    %21 = vector.extract_strided_slice %19 {offsets = [0, 0], sizes = [8, 1], strides = [1, 1]} : vector<8x7xf32> to vector<8x1xf32>
    %c0_21 = arith.constant 0 : index
    %c0_22 = arith.constant 0 : index
    %c0_23 = arith.constant 0 : index
    %22 = vector.load %arg10[%c0_21, %c0_22, %c0_23] : memref<7x8x8xf32, #tpu.memory_space<vmem>>, vector<1x8x8xf32>
    %23 = vector.shape_cast %22 : vector<1x8x8xf32> to vector<8x8xf32>
    %24 = vector.broadcast %21 : vector<8x1xf32> to vector<8x8xf32>
    %25 = arith.mulf %24, %23 : vector<8x8xf32>
    %26 = arith.addf %20, %25 : vector<8x8xf32>
    %27 = vector.extract_strided_slice %19 {offsets = [0, 1], sizes = [8, 1], strides = [1, 1]} : vector<8x7xf32> to vector<8x1xf32>
    %c1 = arith.constant 1 : index
    %c0_24 = arith.constant 0 : index
    %c0_25 = arith.constant 0 : index
    %28 = vector.load %arg10[%c1, %c0_24, %c0_25] : memref<7x8x8xf32, #tpu.memory_space<vmem>>, vector<1x8x8xf32>
    %29 = vector.shape_cast %28 : vector<1x8x8xf32> to vector<8x8xf32>
    %30 = vector.broadcast %27 : vector<8x1xf32> to vector<8x8xf32>
    %31 = arith.mulf %30, %29 : vector<8x8xf32>
    %32 = arith.addf %26, %31 : vector<8x8xf32>
    %33 = vector.extract_strided_slice %19 {offsets = [0, 2], sizes = [8, 1], strides = [1, 1]} : vector<8x7xf32> to vector<8x1xf32>
    %c2 = arith.constant 2 : index
    %c0_26 = arith.constant 0 : index
    %c0_27 = arith.constant 0 : index
    %34 = vector.load %arg10[%c2, %c0_26, %c0_27] : memref<7x8x8xf32, #tpu.memory_space<vmem>>, vector<1x8x8xf32>
    %35 = vector.shape_cast %34 : vector<1x8x8xf32> to vector<8x8xf32>
    %36 = vector.broadcast %33 : vector<8x1xf32> to vector<8x8xf32>
    %37 = arith.mulf %36, %35 : vector<8x8xf32>
    %38 = arith.addf %32, %37 : vector<8x8xf32>
    %39 = vector.extract_strided_slice %19 {offsets = [0, 3], sizes = [8, 1], strides = [1, 1]} : vector<8x7xf32> to vector<8x1xf32>
    %c3 = arith.constant 3 : index
    %c0_28 = arith.constant 0 : index
    %c0_29 = arith.constant 0 : index
    %40 = vector.load %arg10[%c3, %c0_28, %c0_29] : memref<7x8x8xf32, #tpu.memory_space<vmem>>, vector<1x8x8xf32>
    %41 = vector.shape_cast %40 : vector<1x8x8xf32> to vector<8x8xf32>
    %42 = vector.broadcast %39 : vector<8x1xf32> to vector<8x8xf32>
    %43 = arith.mulf %42, %41 : vector<8x8xf32>
    %44 = arith.addf %38, %43 : vector<8x8xf32>
    %45 = vector.extract_strided_slice %19 {offsets = [0, 4], sizes = [8, 1], strides = [1, 1]} : vector<8x7xf32> to vector<8x1xf32>
    %c4 = arith.constant 4 : index
    %c0_30 = arith.constant 0 : index
    %c0_31 = arith.constant 0 : index
    %46 = vector.load %arg10[%c4, %c0_30, %c0_31] : memref<7x8x8xf32, #tpu.memory_space<vmem>>, vector<1x8x8xf32>
    %47 = vector.shape_cast %46 : vector<1x8x8xf32> to vector<8x8xf32>
    %48 = vector.broadcast %45 : vector<8x1xf32> to vector<8x8xf32>
    %49 = arith.mulf %48, %47 : vector<8x8xf32>
    %50 = arith.addf %44, %49 : vector<8x8xf32>
    %51 = vector.extract_strided_slice %19 {offsets = [0, 5], sizes = [8, 1], strides = [1, 1]} : vector<8x7xf32> to vector<8x1xf32>
    %c5 = arith.constant 5 : index
    %c0_32 = arith.constant 0 : index
    %c0_33 = arith.constant 0 : index
    %52 = vector.load %arg10[%c5, %c0_32, %c0_33] : memref<7x8x8xf32, #tpu.memory_space<vmem>>, vector<1x8x8xf32>
    %53 = vector.shape_cast %52 : vector<1x8x8xf32> to vector<8x8xf32>
    %54 = vector.broadcast %51 : vector<8x1xf32> to vector<8x8xf32>
    %55 = arith.mulf %54, %53 : vector<8x8xf32>
    %56 = arith.addf %50, %55 : vector<8x8xf32>
    %57 = vector.extract_strided_slice %19 {offsets = [0, 6], sizes = [8, 1], strides = [1, 1]} : vector<8x7xf32> to vector<8x1xf32>
    %c6 = arith.constant 6 : index
    %c0_34 = arith.constant 0 : index
    %c0_35 = arith.constant 0 : index
    %58 = vector.load %arg10[%c6, %c0_34, %c0_35] : memref<7x8x8xf32, #tpu.memory_space<vmem>>, vector<1x8x8xf32>
    %59 = vector.shape_cast %58 : vector<1x8x8xf32> to vector<8x8xf32>
    %60 = vector.broadcast %57 : vector<8x1xf32> to vector<8x8xf32>
    %61 = arith.mulf %60, %59 : vector<8x8xf32>
    %62 = arith.addf %56, %61 : vector<8x8xf32>
    %63 = arith.addf %17, %62 : vector<8x8xf32>
    %cst_36 = arith.constant 0.176776692 : f32
    %64 = vector.broadcast %cst_36 : f32 to vector<8x8xf32>
    %65 = arith.mulf %63, %64 : vector<8x8xf32>
    %c0_37 = arith.constant 0 : index
    %c0_38 = arith.constant 0 : index
    %66 = vector.load %arg11[%c0_37, %c0_38] : memref<8x8xf32, #tpu.memory_space<vmem>>, vector<8x8xf32>
    %67 = arith.addf %65, %66 : vector<8x8xf32>
    %c0_39 = arith.constant 0 : index
    %c0_40 = arith.constant 0 : index
    %c0_41 = arith.constant 0 : index
    %68 = vector.load %arg2[%c0_39, %c0_40, %c0_41] : memref<1x8x8xf32, #tpu.memory_space<vmem>>, vector<1x8x8xf32>
    %69 = vector.shape_cast %68 : vector<1x8x8xf32> to vector<8x8xf32>
    %cst_42 = arith.constant 0.000000e+00 : f32
    %70 = vector.broadcast %cst_42 : f32 to vector<8x8xf32>
    %71 = arith.cmpf ogt, %69, %70 : vector<8x8xf32>
    %cst_43 = arith.constant -1.000000e+09 : f32
    %72 = vector.broadcast %cst_43 : f32 to vector<8x8xf32>
    %73 = arith.select %71, %67, %72 : vector<8x8xi1>, vector<8x8xf32>
    %c0_44 = arith.constant 0 : index
    %c0_45 = arith.constant 0 : index
    %c0_46 = arith.constant 0 : index
    %74 = vector.load %arg12[%c0_44, %c0_45, %c0_46] : memref<1x8x8xf32, #tpu.memory_space<vmem>>, vector<1x8x8xf32>
    %75 = vector.shape_cast %74 : vector<1x8x8xf32> to vector<8x8xf32>
    %76 = vector.shape_cast %73 : vector<8x8xf32> to vector<1x8x8xf32>
    tpu.vector_store %arg12[%c0_44, %c0_45, %c0_46], %76 {strides = array<i32>} : memref<1x8x8xf32, #tpu.memory_space<vmem>>, vector<1x8x8xf32>,
    return
  }
  func.func @transform_0(%arg0: i32) -> (i32, i32, i32) {
    %c0_i32 = arith.constant 0 : i32
    %c0_i32_0 = arith.constant 0 : i32
    %c0_i32_1 = arith.constant 0 : i32
    return %arg0, %c0_i32, %c0_i32_0 : i32, i32, i32
  }
  func.func @transform_1(%arg0: i32) -> (i32, i32, i32) {
    %c0_i32 = arith.constant 0 : i32
    %c0_i32_0 = arith.constant 0 : i32
    %c0_i32_1 = arith.constant 0 : i32
    return %arg0, %c0_i32, %c0_i32_0 : i32, i32, i32
  }
  func.func @transform_2(%arg0: i32) -> (i32, i32) {
    %c0_i32 = arith.constant 0 : i32
    %c0_i32_0 = arith.constant 0 : i32
    %c0_i32_1 = arith.constant 0 : i32
    return %c0_i32, %c0_i32_0 : i32, i32
  }
  func.func @transform_3(%arg0: i32) -> (i32, i32) {
    %c0_i32 = arith.constant 0 : i32
    %c0_i32_0 = arith.constant 0 : i32
    %c0_i32_1 = arith.constant 0 : i32
    return %c0_i32, %c0_i32_0 : i32, i32
  }
  func.func @transform_4(%arg0: i32) -> (i32, i32) {
    %c0_i32 = arith.constant 0 : i32
    %c0_i32_0 = arith.constant 0 : i32
    %c0_i32_1 = arith.constant 0 : i32
    return %c0_i32, %c0_i32_0 : i32, i32
  }
  func.func @transform_5(%arg0: i32) -> (i32, i32) {
    %c0_i32 = arith.constant 0 : i32
    %c0_i32_0 = arith.constant 0 : i32
    %c0_i32_1 = arith.constant 0 : i32
    return %c0_i32, %c0_i32_0 : i32, i32
  }
  func.func @transform_6(%arg0: i32) -> (i32, i32) {
    %c0_i32 = arith.constant 0 : i32
    %c0_i32_0 = arith.constant 0 : i32
    %c0_i32_1 = arith.constant 0 : i32
    return %c0_i32, %c0_i32_0 : i32, i32
  }
  func.func @transform_7(%arg0: i32) -> (i32, i32) {
    %c0_i32 = arith.constant 0 : i32
    %c0_i32_0 = arith.constant 0 : i32
    %c0_i32_1 = arith.constant 0 : i32
    return %c0_i32, %c0_i32_0 : i32, i32
  }
  func.func @transform_8(%arg0: i32) -> (i32, i32) {
    %c0_i32 = arith.constant 0 : i32
    %c0_i32_0 = arith.constant 0 : i32
    %c0_i32_1 = arith.constant 0 : i32
    return %c0_i32, %c0_i32_0 : i32, i32
  }
  func.func @transform_9(%arg0: i32) -> (i32, i32, i32) {
    %c0_i32 = arith.constant 0 : i32
    %c0_i32_0 = arith.constant 0 : i32
    %c0_i32_1 = arith.constant 0 : i32
    %c0_i32_2 = arith.constant 0 : i32
    return %c0_i32, %c0_i32_0, %c0_i32_1 : i32, i32, i32
  }
  func.func @transform_10(%arg0: i32) -> (i32, i32) {
    %c0_i32 = arith.constant 0 : i32
    %c0_i32_0 = arith.constant 0 : i32
    %c0_i32_1 = arith.constant 0 : i32
    return %c0_i32, %c0_i32_0 : i32, i32
  }
  func.func @transform_11(%arg0: i32) -> (i32, i32, i32) {
    %c0_i32 = arith.constant 0 : i32
    %c0_i32_0 = arith.constant 0 : i32
    %c0_i32_1 = arith.constant 0 : i32
    return %arg0, %c0_i32, %c0_i32_0 : i32, i32, i32
  }
}

</mosaic_0001>

<bundles_post_ra>
// kernel: cause_dag_no_emotion_forward.3
= control target key start
LH: loop header
LB: loop body
LE: loop exit
PB: predicated region body
PF: predicated region fallthrough
CT: control target
= control target key end

     0   :  { %s1432_s0 = inlined_call_operand.vmem [shape: f32[2,8,32], index: 0, kind: input, shape index: {}]   ;;  %s1433_s1 = inlined_call_operand.vmem [shape: f32[2,8,8], index: 1, kind: input, shape index: {}]   ;;  %s1434_s2 = inlined_call_operand.vmem [shape: f32[32,32], index: 2, kind: input, shape index: {}]   ;;  %s1435_s3 = inlined_call_operand.vmem [shape: f32[1,32], index: 3, kind: input, shape index: {}]   ;;  %s1436_s4 = inlined_call_operand.vmem [shape: f32[32,32], index: 4, kind: input, shape index: {}]   ;;  %s1437_s5 = inlined_call_operand.vmem [shape: f32[1,32], index: 5, kind: input, shape index: {}]   ;;  %s1438_s6 = inlined_call_operand.vmem [shape: f32[32,32], index: 6, kind: input, shape index: {}]   ;;  %s1439_s7 = inlined_call_operand.vmem [shape: f32[1,32], index: 7, kind: input, shape index: {}]   ;;  %s1440_s8 = inlined_call_operand.vmem [shape: f32[7,32], index: 8, kind: input, shape index: {}]   ;;  %s1441_s9 = inlined_call_operand.vmem [shape: f32[7,8,8], index: 9, kind: input, shape index: {}]   ;;  %s1442_s10 = inlined_call_operand.vmem [shape: f32[8,8], index: 10, kind: input, shape index: {}]   ;;  %s1443_s11 = inlined_call_operand.hbm [shape: f32[2,8,8], index: 11, kind: output, shape index: {}]  }
   0x1   :  { %1444 = sst [smem:[#allocation5_spill]] %s1432_s0 }
   0x2   :  { %1445 = sst [smem:[#allocation6_spill]] %s1434_s2 }
   0x3   :  { %1446 = sst [smem:[#allocation7_spill]] %s1435_s3 }
   0x4   :  { %16 = vsyncpa [#allocation3], 0 }
   0x5   :  { %18 = vsyncpa [#allocation3 + $0x1], 0  ;;  %s1226_s17 = smov 0   ;;  %s1228_s18 = smov 0  }
   0x6   :  { %s1230_s19 = smov 0   ;;  %s1232_s20 = smov 0  }
   0x7 LB: > { %s1247_s21 = sadd.s32 4294967295, %s1154_s20   ;;  %s949_s22 = sadd.s32 4294967294, %s1154_s20   ;;  %s1154_s20 = sphi %s1232_s20, %s1455_s20   ;;  %s1150_s19 = sphi %s1230_s19, %s1454_s19   ;;  %s1146_s18 = sphi %s1228_s18, %s1453_s18   ;;  %s1142_s17 = sphi %s1226_s17, %s1452_s17  }
   0x8   : > { %s1251_s23 = sadd.s32 1, %s1154_s20   ;;  %s272_s24 = sadd.s32 1, %s1150_s19 }
   0x9   : > { %s269_s25 = ssub.s32 %s1154_s20, %s1251_s23  ;;  %p282_p0 = scmp.ne.s32.totalorder %s1150_s19, %s1146_s18 }
   0xa   : > { %p270_p1 = scmp.eq.s32.totalorder %s269_s25, 0  ;;  %p283_p2 = scmp.eq.s32.totalorder %s1247_s21, 1 }
   0xb   : > { %p288_p3 = scmp.ne.s32.totalorder %s1146_s18, %s1142_s17  ;;  %p289_p4 = scmp.eq.s32.totalorder %s949_s22, 1 }
   0xc   : > { %s1262_s26 = scalar_select %p270_p1, %s1150_s19, %s272_s24  }
   0xd   : > { %p1264_p5 = por %p283_p2, %p282_p0  ;;  %p1268_p6 = por %p289_p4, %p288_p3 }
   0xe   : > { %p952_p7 = scmp.ge.s32.totalorder %s1154_s20, 1  ;;  %p348_p8 = scmp.lt.s32.totalorder %s1154_s20, 3 }
  0x10   : > { %p349_p9 = pnand %p952_p7, %p348_p8 }
  0x11   : > { %s1449_s2 = sld [smem:[#allocation6_spill]] (!%p349_p9)  ;;  %p391_p10 = scmp.lt.s32.totalorder (!%p349_p9), %s1247_s21, 1 }
  0x12   : > { %352 = sbr.rel (%p349_p9) target bundleno = 778 (0x30a), region = 64  ;;  %s1450_s0 = sld [smem:[#allocation5_spill]] (!%p349_p9) }
  0x13   : > { %s1451_s3 = sld [smem:[#allocation7_spill]] (!%p349_p9)  ;;  %s388_s29 = sand.u32 (!%p349_p9), 1, %s1146_s18  }
  0x14   : > { %s953_s12 = sshll.u32 (!%p349_p9), %s388_s29, 3  ;;  %s973_s24 = sshll.u32 (!%p349_p9), %s1247_s21, 7 }
  0x15   : > { %s390_s25 = scalar_lea.vmem (!%p349_p9), [#allocation2], %s953_s12  ;;  %s1397_s13 = scalar_lea.hbm (!%p349_p9), %s1443_s11, %s973_s24 }
  0x17   : > { %v403_v0 = vld [vmem:[%s1449_s2 + $0x18] sm:$0xff]  ;;  %v1156_v1 = vmov 0.0   ;;  %v402_v2 = vld [vmem:[%s1449_s2 + $0x10] sm:$0xff]  ;;  %vm1157_vm0 = vmmov 0   ;;  %s1288_s16 = scalar_select %p391_p10, %s1247_s21, 1  ;;  %v401_v5 = vld [vmem:[%s1449_s2 + $0x8] sm:$0xff] }
  0x18   : > { %995 = vmatprep.subr.mxu0 %v1156_v1  ;;  %1003 = vmatprep.mubr.msk.f32.mxu0 %vm1157_vm0, %v1156_v1  ;;  %v488_v3 = vld [vmem:[%s1436_s4 + $0x18] sm:$0xff]  ;;  %v487_v4 = vld [vmem:[%s1436_s4 + $0x10] sm:$0xff]  ;;  %v400_v6 = vld [vmem:[%s1449_s2] sm:$0xff]  ;;  %vm411_vm1 = vcmask 261120   ;;  %v1158_v19 = vmov 2   ;;  %v1159_v20 = vmov 0  }
  0x19   : > { %996 = vmatpush3.msra.mxu0 %v403_v0  ;;  %1006 = vmatprep.subr.mxu1 %v1156_v1  ;;  %s954_s30 = sshll.u32 %s1288_s16, 3  ;;  %v572_v8 = vld [vmem:[%s1438_s6 + $0x18] sm:$0xff]  ;;  %v571_v9 = vld [vmem:[%s1438_s6 + $0x10] sm:$0xff]  ;;  %v486_v10 = vld [vmem:[%s1436_s4 + $0x8] sm:$0xff]  ;;  %v1160_v32 = vmov 3   ;;  %v1161_v33 = vmov 1  }
  0x1a   : > { %997 = vmatprep.subr.mxu0 %v1156_v1  ;;  %1007 = vmatpush3.msra.mxu1 %v488_v3  ;;  %s394_s22 = scalar_lea.vmem %s1450_s0, %s954_s30  ;;  %v570_v11 = vld [vmem:[%s1438_s6 + $0x8] sm:$0xff]  ;;  %v485_v12 = vld [vmem:[%s1436_s4] sm:$0xff]  ;;  %v1162_v35 = vmov 4   ;;  %v1163_v36 = vmov 5   ;;  %v1164_v37 = vmov 6   ;;  %v965_v42 = vld [vmem:[%s1441_s9 + $0x10] sm:$0xff]  ;;  %s398_s15 = scalar_lea.vmem %s1433_s1, %s954_s30 }
  0x1b   : > { %998 = vmatpush3.msra.mxu0 %v402_v2  ;;  %1008 = vmatprep.subr.mxu1 %v1156_v1  ;;  %v399_v7 = vld [vmem:[%s394_s22] sm:$0xff]  ;;  %v964_v41 = vld [vmem:[%s1441_s9 + $0x8] sm:$0xff]  ;;  %v966_v47 = vld [vmem:[%s1441_s9 + $0x18] sm:$0xff]  ;;  %s878_s2 = sshll.u32 %s390_s25, 4  ;;  %vm862_vm3 = vcmask 64512   ;;  %s865_s30 = scalar_lea.sflag [#allocation3], %s388_s29  ;;  %s879_s2 = int_to_ptr.vmem [resolvable:$true] %s878_s2 }
  0x1c   : > { %999 = vmatprep.subr.mxu0 %v1156_v1  ;;  %1009 = vmatpush3.msra.mxu1 %v487_v4  ;;  %v569_v13 = vld [vmem:[%s1438_s6] sm:$0xff]  ;;  %v968_v55 = vld [vmem:[%s1441_s9 + $0x28] sm:$0xff]  ;;  %v969_v58 = vld [vmem:[%s1441_s9 + $0x30] sm:$0xff]  ;;  %s1094_s14 = scalar_lea.vmem %s879_s2, 128  ;;  %s1165_s0 = smov [#allocation2]  }
  0x1d   : > { %1000 = vmatpush3.msra.mxu0 %v401_v5  ;;  %1010 = vmatprep.subr.mxu1 %v1156_v1  ;;  %v956_v14 = vld [vmem:[%s1451_s3] ss:$0 sm:$0xff]  ;;  %p1095_p11 = scmp.ne.s32.totalorder %s879_s2, %s1094_s14  ;;  %s1098_s21 = sshll.u32 %s1165_s0, 4  ;;  %s1099_s21 = int_to_ptr.vmem [resolvable:$false] %s1098_s21 }
  0x1e   : > { %1001 = vmatprep.subr.mxu0 %v1156_v1  ;;  %1014 = vmatprep.mubr.msk.f32.mxu1 %vm1157_vm0, %v1156_v1  ;;  %v650_v17 = vld [vmem:[%s1440_s8] sm:$0x7f]  ;;  %s1100_s12 = scalar_lea.vmem %s1099_s21, 256  ;;  %p1101_p0 = scmp.lt.s32.totalorder %s879_s2, %s1099_s21 }
  0x1f   : > { %1002 = vmatpush3.msra.mxu0 %v400_v6  ;;  %1011 = vmatpush3.msra.mxu1 %v486_v10  ;;  %v958_v21 = vld [vmem:[%s1437_s5] ss:$0 sm:$0xff]  ;;  %p1096_p12 = pnand %p1095_p11, %p1264_p5  ;;  %p1102_p1 = scmp.lt.s32.totalorder %s1100_s12, %s1094_s14 }
  0x20   : > { %1004 = vmatmul.mubr.msk.f32.vlgmr.msra.gmra.mxu0 %vm411_vm1, %v399_v7  ;;  %1017 = vmatprep.subr.mxu0 %v1156_v1  ;;  %v960_v22 = vld [vmem:[%s1439_s7] ss:$0 sm:$0xff] }
  0x21   : > { %1018 = vmatpush3.msra.mxu0 %v572_v8  ;;  %1025 = vmatprep.mubr.msk.f32.mxu0 %vm1157_vm0, %v1156_v1  ;;  %v727_v40 = vld [vmem:[%s1441_s9] sm:$0xff]  ;;  %p1097_p13 = pneg %p1096_p12  ;;  %p1103_p2 = por %p1102_p1, %p1101_p0 }
  0x22   : > { %1019 = vmatprep.subr.mxu0 %v1156_v1  ;;  %1012 = vmatprep.subr.mxu1 %v1156_v1  ;;  %v967_v50 = vld [vmem:[%s1441_s9 + $0x20] sm:$0xff] }
  0x23   : > { %1020 = vmatpush3.msra.mxu0 %v571_v9  ;;  %1013 = vmatpush3.msra.mxu1 %v485_v12  ;;  %v857_v3 = vld [vmem:[%s1442_s10] sm:$0xff]  ;;  %p1104_p3 = pnand %p1103_p2, %p1097_p13 }
  0x24   : > { %1021 = vmatprep.subr.mxu0 %v1156_v1  ;;  %1028 = vmatprep.subr.mxu1 %v1156_v1 }
  0x25   : > { %1022 = vmatpush3.msra.mxu0 %v570_v11  ;;  %1088 = vset.pattern.permute.xlu1 %v1158_v19 }
  0x26   : > { %1023 = vmatprep.subr.mxu0 %v1156_v1  ;;  %1086 = vset.pattern.permute.xlu0 %v1159_v20 }
  0x27   : > { %1024 = vmatpush3.msra.mxu0 %v569_v13 }
  0xe0   : > { %v481_v15 = vpop.f32.mrf.mxu0 }
  0xe1   : > { %v482_v16 = vadd.f32 %v956_v14, %v481_v15 }
  0xe2   : > { %v1005_v18 = vpop.f32.mrf.mxu0 }
  0xe3   : > { %1015 = vmatmul.mubr.msk.f32.vlgmr.msra.gmra.mxu1 %vm411_vm1, %v482_v16  ;;  %1026 = vmatmul.mubr.msk.f32.vlgmr.msra.gmra.mxu0 %vm411_vm1, %v482_v16 }
  0xe4   : > { %1029 = vmatpush3.xpose.msk.msra.mxu1 %vm411_vm1, %v650_v17  ;;  %1030 = vmatprep.mubr.msk.f32.mxu1 %vm1157_vm0, %v1156_v1 }
  0xe5   : > { %1033 = vmatprep.subr.mxu1 %v1156_v1 }
 0x1a3   : > { %v565_v23 = vpop.f32.mrf.mxu1  ;;  %v646_v24 = vpop.f32.mrf.mxu0 }
 0x1a4   : > { %v566_v25 = vadd.f32 %v958_v21, %v565_v23  ;;  %v647_v26 = vadd.f32 %v960_v22, %v646_v24 }
 0x1a5   : > { %v1016_v27 = vpop.f32.mrf.mxu1  ;;  %v1027_v28 = vpop.f32.mrf.mxu0 }
 0x1a6   : > { %1031 = vmatmul.mubr.msk.f32.vlgmr.msra.gmra.mxu1 %vm411_vm1, %v566_v25 }
 0x1a7   : > { %1034 = vmatpush3.xpose.msk.msra.mxu1 %vm411_vm1, %v647_v26  ;;  %1035 = vmatprep.mubr.msk.f32.mxu1 %vm1157_vm0, %v1156_v1  ;;  %v859_v1 = vld [vmem:[%s398_s15] sm:$0xff] }
 0x1a8   : > { %vm860_vm2 = vcmp.gt.f32.partialorder %v859_v1, 0.0 }
 0x1aa   : > { %1036 = vmatmul.mubr.msk.f32.vlgmr.msra.gmra.mxu1 %vm411_vm1, %v566_v25 }
 0x266   : > { %v723_v29 = vpop.f32.mrf.mxu1 }
 0x267   : > { %746 = vperm.xlu1 %1088, %v723_v29   ;;  %730 = vperm.xlu0 %1086, %v723_v29  }
 0x268   : > { %v1032_v30 = vpop.f32.mrf.mxu1 }
 0x26a   : > { %v852_v31 = vpop.f32.mrf.mxu1 }
 0x26b   : > { %1089 = vset.pattern.permute.xlu1 %v1160_v32  ;;  %1087 = vset.pattern.permute.xlu0 %v1161_v33 }
 0x26c   : > { %754 = vperm.xlu1 %1089, %v723_v29   ;;  %738 = vperm.xlu0 %1087, %v723_v29   ;;  %v1037_v34 = vpop.f32.mrf.mxu1 }
 0x270   : > { %1090 = vset.pattern.permute.xlu1 %v1162_v35  ;;  %1091 = vset.pattern.permute.xlu0 %v1163_v36 }
 0x271   : > { %762 = vperm.xlu1 %1090, %v723_v29   ;;  %770 = vperm.xlu0 %1091, %v723_v29  }
 0x275   : > { %1092 = vset.pattern.permute.xlu1 %v1164_v37  ;;  %1093 = vset.pattern.permute.xlu0 %v1164_v37 }
 0x276   : > { %778 = vperm.xlu1 %1092, %v723_v29  }
 0x2e2   : > { %v747_v38 = vpop.permute.xlu1 %746  ;;  %v731_v39 = vpop.permute.xlu0 %730 }
 0x2e3   : > { %v733_v45 = vmul.f32 %v731_v39, %v727_v40  ;;  %v749_v48 = vmul.f32 %v965_v42, %v747_v38 }
 0x2e7   : > { %v755_v43 = vpop.permute.xlu1 %754  ;;  %v739_v44 = vpop.permute.xlu0 %738 }
 0x2e8   : > { %v741_v46 = vmul.f32 %v964_v41, %v739_v44  ;;  %v757_v51 = vmul.f32 %v966_v47, %v755_v43 }
 0x2ea   : > { %v742_v49 = vadd.f32 %v741_v46, %v733_v45 }
 0x2ec   : > { %v750_v52 = vadd.f32 %v749_v48, %v742_v49  ;;  %v763_v53 = vpop.permute.xlu1 %762  ;;  %v771_v56 = vpop.permute.xlu0 %770 }
 0x2ed   : > { %v765_v54 = vmul.f32 %v967_v50, %v763_v53  ;;  %v773_v60 = vmul.f32 %v968_v55, %v771_v56 }
 0x2ee   : > { %v758_v57 = vadd.f32 %v757_v51, %v750_v52 }
 0x2f0   : > { %v766_v59 = vadd.f32 %v765_v54, %v758_v57 }
 0x2f1   : > { %v779_v61 = vpop.permute.xlu1 %778 }
 0x2f2   : > { %v774_v62 = vadd.f32 %v773_v60, %v766_v59  ;;  %v781_v63 = vmul.f32 %v969_v58, %v779_v61 }
 0x2f4   : > { %v782_v0 = vadd.f32 %v781_v63, %v774_v62 }
 0x2f6   : > { %v853_v2 = vadd.f32 %v852_v31, %v782_v0 }
 0x2f8   : > { %v856_v4 = vmul.f32 0.17677669, %v853_v2 }
 0x2fa   : > { %v858_v5 = vadd.f32 %v857_v3, %v856_v4 }
 0x2fc   : > { %v861_v6 = vsel %vm860_vm2, %v858_v5, -1e+09 }
 0x2fd   : > { %863 = vst.msk [vmem:[%s390_s25] sm:$0xff] %vm862_vm3, %v861_v6 }
 0x2fe   : > { %1107 = shalt.err (!%p1104_p3)
}
 0x2ff   : > { %s1108_s3 = scalar_lea.hbm %s1397_s13, 128  ;;  %s1112_s22 = scalar_lea.hbm %s1443_s11, 256 }
 0x300   : > { %p1109_p4 = scmp.ne.s32.totalorder %s1397_s13, %s1108_s3  ;;  %p1113_p9 = scmp.lt.s32.totalorder %s1397_s13, %s1443_s11 }
 0x301   : > { %p1114_p10 = scmp.lt.s32.totalorder %s1112_s22, %s1108_s3 }
 0x302   : > { %p1110_p7 = pnand %p1109_p4, %p1264_p5 }
 0x303   : > { %p1115_p11 = por %p1114_p10, %p1113_p9 }
 0x304   : > { %p1111_p8 = pneg %p1110_p7 }
 0x306   : > { %p1116_p12 = pnand %p1115_p11, %p1111_p8 }
 0x308   : > { %1119 = shalt.err (!%p1116_p12)
}
 0x309   : > { %1038 = dma.vmem_to_hbm [thread:$0]  (%p1264_p5), %s879_s2, 128, %s1397_s13, %s865_s30  }
 0x30a PF: > { %p1044_p13 = scmp.ge.s32.totalorder %s1154_s20, 2  ;;  %s890_s16 = sand.u32 1, %s1142_s17  }
 0x30b   : > { %s891_s14 = scalar_lea.sflag [#allocation3], %s890_s16 }
 0x30c   : > { %p1041_p0 = pnand %p1044_p13, %p1268_p6 }
 0x30e   : > { %p1042_p1 = pneg %p1041_p0 }
 0x310   : > { %1137 = dma.done.wait (%p1042_p1), %s891_s14, 128  }
 0x311   : > { %1139 = vsyncadd (%p1042_p1), %s891_s14, 4294967168  ;;  %p21_p2 = scmp.ge.s32.totalorder %s1251_s23, 4   ;;  %s1452_s17 = smov %s1146_s18 }
 0x312   : > { %s1453_s18 = smov %s1150_s19  ;;  %s1454_s19 = smov %s1262_s26 }
 0x313   : > { %s1455_s20 = smov %s1251_s23  ;;  %23 = sbr.rel (!%p21_p2) target bundleno = 7 (0x7), region = 108 }
 0x318   :  { %896 = vsyncpa [#allocation3], 1 }
 0x319   :  { %898 = vsyncpa [#allocation3 + $0x1], 1 }

// kernel: cause_dag_no_emotion_forward.2
= control target key start
LH: loop header
LB: loop body
LE: loop exit
PB: predicated region body
PF: predicated region fallthrough
CT: control target
= control target key end

     0   :  { %s2887_s21 = smov 0   ;;  %s3242_s0 = inlined_call_operand.vmem [shape: f32[2,8,12,32], index: 0, kind: input, shape index: {}]   ;;  %s3243_s1 = inlined_call_operand.vmem [shape: f32[2,8,12], index: 1, kind: input, shape index: {}]   ;;  %s3244_s2 = inlined_call_operand.vmem [shape: f32[2,8,8], index: 2, kind: input, shape index: {}]   ;;  %s3245_s3 = inlined_call_operand.vmem [shape: f32[32,32], index: 3, kind: input, shape index: {}]   ;;  %s3246_s4 = inlined_call_operand.vmem [shape: f32[1,32], index: 4, kind: input, shape index: {}]   ;;  %s3247_s5 = inlined_call_operand.vmem [shape: f32[32,32], index: 5, kind: input, shape index: {}]   ;;  %s3248_s6 = inlined_call_operand.vmem [shape: f32[32,32], index: 6, kind: input, shape index: {}]   ;;  %s3249_s7 = inlined_call_operand.vmem [shape: f32[32,96], index: 7, kind: input, shape index: {}]   ;;  %s3250_s8 = inlined_call_operand.vmem [shape: f32[1,96], index: 8, kind: input, shape index: {}]   ;;  %s3251_s9 = inlined_call_operand.vmem [shape: f32[32,32], index: 9, kind: input, shape index: {}]   ;;  %s3252_s10 = inlined_call_operand.vmem [shape: f32[1,32], index: 10, kind: input, shape index: {}]   ;;  %s3253_s11 = inlined_call_operand.vmem [shape: f32[4,32], index: 11, kind: input, shape index: {}]   ;;  %s3254_s12 = inlined_call_operand.vmem [shape: f32[32,64], index: 12, kind: input, shape index: {}]   ;;  %s3255_s13 = inlined_call_operand.vmem [shape: f32[1,64], index: 13, kind: input, shape index: {}]   ;;  %s3256_s14 = inlined_call_operand.vmem [shape: f32[64,32], index: 14, kind: input, shape index: {}]   ;;  %s3257_s15 = inlined_call_operand.vmem [shape: f32[1,32], index: 15, kind: input, shape index: {}]   ;;  %s3258_s16 = inlined_call_operand.vmem [shape: f32[2,8,32], index: 16, kind: output, shape index: {}]  }
   0x1   :  { %3259 = sst [smem:[#allocation2_spill]] %s3242_s0 }
   0x2 LB: > { %s2484_s22 = sadd.s32 4294967295, %s2787_s21   ;;  %p2488_p0 = scmp.ge.s32.totalorder %s2787_s21, 1  ;;  %s2787_s21 = sphi %s2887_s21, %s26_s21  }
   0x3   : > { %p480_p1 = scmp.lt.s32.totalorder %s2787_s21, 3 }
   0x5   : > { %p481_p2 = pnand %p2488_p0, %p480_p1 }
   0x6   : > { %p537_p3 = scmp.lt.s32.totalorder (!%p481_p2), %s2484_s22, 1  ;;  %s3260_s28 = sld [smem:[#allocation2_spill]] (!%p481_p2) }
   0x7   : > { %484 = sbr.rel (%p481_p2) target bundleno = 4223 (0x107f), region = 84  ;;  %s2791_s19 = smov (!%p481_p2), 88  }
   0x8   : > { %s2792_s20 = smov (!%p481_p2), 96   ;;  %s2793_s24 = smov (!%p481_p2), 120  }
   0x9   : > { %s2796_s27 = smov (!%p481_p2), 80   ;;  %s2798_s17 = smov (!%p481_p2), 72  }
   0xa   : > { %s2799_s18 = smov (!%p481_p2), 104  }
   0xc   : > { %v571_v0 = vlaneseq  ;;  %s3262_s22 = smov (!%p537_p3, %s2484_s22), 1  ;;  %vm749_vm0 = vcmask 97280   ;;  %v2912_v5 = vld [vmem:[%s3253_s11] sm:$0xf]  ;;  %v789_v23 = vld [vmem:[%s3245_s3 + $0x18] sm:$0xff]  ;;  %v2789_v24 = vmov 0.0  }
   0xd   : > { %s2900_s23 = sshll.u32 %s3262_s22, 3  ;;  %2585 = vmatprep.subr.mxu0 %v2789_v24  ;;  %v788_v25 = vld [vmem:[%s3245_s3 + $0x10] sm:$0xff]  ;;  %vm2790_vm1 = vmmov 0   ;;  %2596 = vmatprep.subr.mxu1 %v2789_v24  ;;  %v787_v26 = vld [vmem:[%s3245_s3 + $0x8] sm:$0xff]  ;;  %v786_v27 = vld [vmem:[%s3245_s3] sm:$0xff]  ;;  %s2524_s25 = sshll.u32 %s3262_s22, 7 }
   0xe   : > { %v2897_v1 = vshrl.u32 %v571_v0, 7  ;;  %s545_s26 = scalar_lea.vmem %s3243_s1, %s2900_s23  ;;  %2593 = vmatprep.mubr.msk.f32.mxu0 %vm2790_vm1, %v2789_v24  ;;  %2586 = vmatpush3.msra.mxu0 %v789_v23  ;;  %s2955_s29 = scalar_lea.vmem %s3260_s28, %s2524_s25  ;;  %vm677_vm2 = vcmask 257024   ;;  %vm675_vm3 = vcmask 261120   ;;  %vm806_vm4 = vcmask 1041409  }
   0xf   : > { %v570_v6 = vld [vmem:[%s545_s26] sm:$0xff]  ;;  %2587 = vmatprep.subr.mxu0 %v2789_v24  ;;  %2598 = vmatprep.mubr.msk.f32.mxu1 %vm2790_vm1, %v2789_v24  ;;  %v559_v31 = vld [vmem:[%s2955_s29 + $0x28] sm:$0xf]  ;;  %v560_v47 = vld [vmem:[%s2955_s29 + $0x30] sm:$0xff]  ;;  %vm809_vm5 = vcmask 1042434   ;;  %vm812_vm6 = vcmask 1043459  }
  0x10   : > { %v584_v2 = vsub.s32 1, %v2897_v1  ;;  %v595_v3 = vsub.s32 2, %v2897_v1  ;;  %v606_v4 = vsub.s32 3, %v2897_v1  ;;  %v750_v9 = vsel %vm749_vm0, %v570_v6, 0.0  ;;  %2588 = vmatpush3.msra.mxu0 %v788_v25  ;;  %v558_v32 = vld [vmem:[%s2955_s29 + $0x20] sm:$0xff]  ;;  %v556_v57 = vld [vmem:[%s2955_s29 + $0x10] sm:$0xff] }
  0x11   : > { %751 = vadd.xlane.f32.xlu0 %v750_v9  ;;  %v573_v12 = vsub.s32 0, %v2897_v1  ;;  %v617_v15 = vsub.s32 4, %v2897_v1  ;;  %v628_v17 = vsub.s32 5, %v2897_v1  ;;  %v639_v19 = vsub.s32 6, %v2897_v1  ;;  %2589 = vmatprep.subr.mxu0 %v2789_v24  ;;  %v554_v35 = vld [vmem:[%s2955_s29] sm:$0xff]  ;;  %s2794_s25 = smov 56  }
  0x12   : > { %v2915_v7 = vrot.slane %v2912_v5, %v595_v3  ;;  %v2918_v8 = vrot.slane %v2912_v5, %v606_v4  ;;  %v585_v10 = vrot.slane %v570_v6, %v584_v2  ;;  %v596_v11 = vrot.slane %v570_v6, %v595_v3  ;;  %2590 = vmatpush3.msra.mxu0 %v787_v26  ;;  %v555_v36 = vld [vmem:[%s2955_s29 + $0x8] sm:$0xf]  ;;  %v557_v48 = vld [vmem:[%s2955_s29 + $0x18] sm:$0xf]  ;;  %s2795_s26 = smov 64   ;;  %s2797_s28 = smov 112  }
  0x13   : > { %v574_v13 = vrot.slane %v570_v6, %v573_v12  ;;  %v607_v14 = vrot.slane %v570_v6, %v606_v4  ;;  %v618_v16 = vrot.slane %v570_v6, %v617_v15  ;;  %v629_v18 = vrot.slane %v570_v6, %v628_v17  ;;  %2591 = vmatprep.subr.mxu0 %v2789_v24  ;;  %v561_v51 = vld [vmem:[%s2955_s29 + $0x38] sm:$0xf]  ;;  %v563_v62 = vld [vmem:[%s2955_s29 + $0x48] sm:$0xf] }
  0x14   : > { %591 = vbcast.lane.b32.xlu1 %v585_v10, 264  ;;  %v640_v20 = vrot.slane %v570_v6, %v639_v19  ;;  %v650_v21 = vsub.s32 7, %v2897_v1  ;;  %2592 = vmatpush3.msra.mxu0 %v786_v27  ;;  %vm815_vm7 = vcmask 1044484   ;;  %vm818_vm8 = vcmask 1045509   ;;  %v2293_v1 = vld [vmem:[%s3256_s14] sm:$0xff] }
  0x15   : > { %2612 = vmatprep.subr.mxu0 %v2789_v24  ;;  %vm821_vm9 = vcmask 1046534   ;;  %vm824_vm10 = vcmask 1047559   ;;  %vm899_vm11 = vcmask 64512   ;;  %vm2308_vm12 = vcmask 523264  }
  0x16   : > { %v651_v22 = vrot.slane %v570_v6, %v650_v21 }
  0x18   : > { %598 = vbcast.lane.b32.xlu1 %v596_v11, 256 }
  0x1c   : > { %602 = vbcast.lane.b32.xlu1 %v596_v11, 264 }
  0x20   : > { %576 = vbcast.lane.b32.xlu1 %v574_v13, 256 }
  0x24   : > { %580 = vbcast.lane.b32.xlu1 %v574_v13, 264 }
  0x27   : > { %587 = vbcast.lane.b32.xlu0 %v585_v10, 256  ;;  %v562_v10 = vld [vmem:[%s2955_s29 + $0x40] sm:$0xff] }
  0x28   : > { %609 = vbcast.lane.b32.xlu1 %v607_v14, 256 }
  0x2b   : > { %620 = vbcast.lane.b32.xlu0 %v618_v16, 256 }
  0x2c   : > { %613 = vbcast.lane.b32.xlu1 %v607_v14, 264 }
  0x2f   : > { %631 = vbcast.lane.b32.xlu0 %v629_v18, 256 }
  0x30   : > { %624 = vbcast.lane.b32.xlu1 %v618_v16, 264 }
  0x33   : > { %642 = vbcast.lane.b32.xlu0 %v640_v20, 256 }
  0x34   : > { %635 = vbcast.lane.b32.xlu1 %v629_v18, 264 }
  0x37   : > { %653 = vbcast.lane.b32.xlu0 %v651_v22, 256 }
  0x38   : > { %646 = vbcast.lane.b32.xlu1 %v640_v20, 264  ;;  %v565_v20 = vld [vmem:[%s2955_s29 + $0x58] sm:$0xf] }
  0x3c   : > { %657 = vbcast.lane.b32.xlu1 %v651_v22, 264 }
  0x86   : > { %v592_v28 = vpop.permute.xlu1 %591 }
  0x87   : > { %v662_v54 = vmul.f32 %v592_v28, %v557_v48  ;;  %v564_v28 = vld [vmem:[%s2955_s29 + $0x50] sm:$0xff] }
  0x89   : > { %v687_v4 = vsel %vm677_vm2, %v662_v54, 0.0 }
  0x8a   : > { %v599_v29 = vpop.permute.xlu1 %598 }
  0x8b   : > { %v663_v37 = vmul.f32 %v599_v29, %v558_v32 }
  0x8d   : > { %v695_v42 = vsel %vm675_vm3, %v663_v37, 0.0  ;;  %v567_v37 = vld [vmem:[%s2955_s29 + $0x68] sm:$0xf] }
  0x8e   : > { %v603_v30 = vpop.permute.xlu1 %602 }
  0x8f   : > { %v664_v34 = vmul.f32 %v603_v30, %v559_v31 }
  0x91   : > { %v696_v40 = vsel %vm677_vm2, %v664_v34, 0.0 }
  0x92   : > { %v577_v33 = vpop.permute.xlu1 %576  ;;  %v697_v44 = vadd.f32 %v696_v40, %v695_v42 }
  0x93   : > { %v659_v38 = vmul.f32 %v577_v33, %v554_v35 }
  0x94   : > { %v698_v55 = vrot.slane %v697_v44, 4 }
  0x95   : > { %v676_v45 = vsel %vm675_vm3, %v659_v38, 0.0 }
  0x96   : > { %v581_v39 = vpop.permute.xlu1 %580  ;;  %v699_v6 = vadd.f32 %v698_v55, %v697_v44  ;;  %v566_v44 = vld [vmem:[%s2955_s29 + $0x60] sm:$0xff]  ;;  %v569_v55 = vld [vmem:[%s2955_s29 + $0x78] sm:$0xf] }
  0x97   : > { %v660_v41 = vmul.f32 %v581_v39, %v555_v36 }
  0x98   : > { %v700_v23 = vrot.slane %v699_v6, 2 }
  0x99   : > { %v678_v43 = vsel %vm677_vm2, %v660_v41, 0.0 }
  0x9a   : > { %v610_v46 = vpop.permute.xlu1 %609  ;;  %v679_v49 = vadd.f32 %v678_v43, %v676_v45  ;;  %v752_v50 = vpop.xlane.xlu0 %751 }
  0x9b   : > { %v665_v52 = vmul.f32 %v610_v46, %v560_v47  ;;  %v2968_v53 = vmax.f32 %v752_v50, 1.0  ;;  %v701_v46 = vadd.f32 %v700_v23, %v699_v6 }
  0x9c   : > { %v680_v58 = vrot.slane %v679_v49, 4 }
  0x9d   : > { %v755_v60 = vrot.slane %v2968_v53, 1  ;;  %v704_v63 = vsel %vm675_vm3, %v665_v52, 0.0  ;;  %v756_v14 = vrot.slane %v2968_v53, 2  ;;  %v757_v25 = vrot.slane %v2968_v53, 3 }
  0x9e   : > { %v614_v56 = vpop.permute.xlu1 %613  ;;  %v588_v61 = vpop.permute.xlu0 %587  ;;  %v681_v13 = vadd.f32 %v680_v58, %v679_v49  ;;  %v758_v34 = vrot.slane %v2968_v53, 4  ;;  %v759_v40 = vrot.slane %v2968_v53, 5  ;;  %v760_v58 = vrot.slane %v2968_v53, 6 }
  0x9f   : > { %v666_v59 = vmul.f32 %v614_v56, %v561_v51  ;;  %v661_v3 = vmul.f32 %v588_v61, %v556_v57  ;;  %2745 = vrcp.f32 %v755_v60 }
  0xa0   : > { %v682_v30 = vrot.slane %v681_v13, 2  ;;  %2747 = vrcp.f32 %v756_v14 }
  0xa1   : > { %v705_v0 = vsel %vm677_vm2, %v666_v59, 0.0  ;;  %v686_v15 = vsel %vm675_vm3, %v661_v3, 0.0  ;;  %2749 = vrcp.f32 %v2968_v53  ;;  %v702_v3 = vrot.slane %v701_v46, 1 }
  0xa2   : > { %v706_v9 = vadd.f32 %v705_v0, %v704_v63  ;;  %v625_v11 = vpop.permute.xlu1 %624  ;;  %v688_v18 = vadd.f32 %v687_v4, %v686_v15  ;;  %v621_v19 = vpop.permute.xlu0 %620  ;;  %2751 = vrcp.f32 %v757_v25  ;;  %v683_v47 = vadd.f32 %v682_v30, %v681_v13  ;;  %v568_v63 = vld [vmem:[%s2955_s29 + $0x70] sm:$0xff]  ;;  %s549_s29 = scalar_lea.vmem %s3244_s2, %s2900_s23 }
  0xa3   : > { %v668_v16 = vmul.f32 %v625_v11, %v563_v62  ;;  %v667_v21 = vmul.f32 %v621_v19, %v562_v10  ;;  %2753 = vrcp.f32 %v758_v34  ;;  %v703_v30 = vadd.f32 %v702_v3, %v701_v46 }
  0xa4   : > { %v707_v17 = vrot.slane %v706_v9, 4  ;;  %v689_v27 = vrot.slane %v688_v18, 4  ;;  %2755 = vrcp.f32 %v759_v40  ;;  %v684_v10 = vrot.slane %v683_v47, 1 }
  0xa5   : > { %v714_v22 = vsel %vm677_vm2, %v668_v16, 0.0  ;;  %v713_v31 = vsel %vm675_vm3, %v667_v21, 0.0  ;;  %2757 = vrcp.f32 %v760_v58 }
  0xa6   : > { %v708_v26 = vadd.f32 %v707_v17, %v706_v9  ;;  %v636_v29 = vpop.permute.xlu1 %635  ;;  %v690_v33 = vadd.f32 %v689_v27, %v688_v18  ;;  %v715_v35 = vadd.f32 %v714_v22, %v713_v31  ;;  %v632_v36 = vpop.permute.xlu0 %631  ;;  %v761_v9 = vrot.slane %v2968_v53, 7 }
  0xa7   : > { %v670_v32 = vmul.f32 %v636_v29, %v565_v20  ;;  %v669_v39 = vmul.f32 %v632_v36, %v564_v28  ;;  %v685_v31 = vadd.f32 %v684_v10, %v683_v47 }
  0xa8   : > { %v709_v38 = vrot.slane %v708_v26, 2  ;;  %v691_v42 = vrot.slane %v690_v33, 2  ;;  %v716_v43 = vrot.slane %v715_v35, 4  ;;  %2759 = vrcp.f32 %v761_v9 }
  0xa9   : > { %v723_v41 = vsel %vm677_vm2, %v670_v32, 0.0  ;;  %v722_v48 = vsel %vm675_vm3, %v669_v39, 0.0 }
  0xaa   : > { %v647_v45 = vpop.permute.xlu1 %646  ;;  %v692_v50 = vadd.f32 %v691_v42, %v690_v33  ;;  %v717_v51 = vadd.f32 %v716_v43, %v715_v35  ;;  %v724_v52 = vadd.f32 %v723_v41, %v722_v48  ;;  %v643_v54 = vpop.permute.xlu0 %642  ;;  %v710_v56 = vadd.f32 %v709_v38, %v708_v26 }
  0xab   : > { %v672_v49 = vmul.f32 %v647_v45, %v567_v37  ;;  %v671_v57 = vmul.f32 %v643_v54, %v566_v44 }
  0xac   : > { %v693_v59 = vrot.slane %v692_v50, 1  ;;  %v718_v60 = vrot.slane %v717_v51, 2  ;;  %v725_v61 = vrot.slane %v724_v52, 4  ;;  %v2746_v16 = vpop.eup %2745  ;;  %v711_v20 = vrot.slane %v710_v56, 1 }
  0xad   : > { %v732_v62 = vsel %vm677_vm2, %v672_v49, 0.0  ;;  %v731_v4 = vsel %vm675_vm3, %v671_v57, 0.0  ;;  %v2748_v27 = vpop.eup %2747 }
  0xae   : > { %v658_v0 = vpop.permute.xlu1 %657  ;;  %v694_v11 = vadd.f32 %v693_v59, %v692_v50  ;;  %v719_v13 = vadd.f32 %v718_v60, %v717_v51  ;;  %v726_v14 = vadd.f32 %v725_v61, %v724_v52  ;;  %v654_v15 = vpop.permute.xlu0 %653  ;;  %v733_v17 = vadd.f32 %v732_v62, %v731_v4 }
  0xaf   : > { %v674_v6 = vmul.f32 %v658_v0, %v569_v55  ;;  %v673_v18 = vmul.f32 %v654_v15, %v568_v63  ;;  %v2750_v29 = vpop.eup %2749  ;;  %v712_v33 = vadd.f32 %v711_v20, %v710_v56  ;;  %v775_v40 = vmul.f32 %v2748_v27, %v703_v30  ;;  %v976_v15 = vld [vmem:[%s3247_s5 + $0x18] sm:$0xff]  ;;  %v2494_v20 = vld [vmem:[%s3246_s4] ss:$0 sm:$0xff]  ;;  %v979_v27 = vld [vmem:[%s3248_s6 + $0x10] sm:$0xff] }
  0xb0   : > { %v773_v21 = vmul.f32 %v2746_v16, %v694_v11  ;;  %v727_v22 = vrot.slane %v726_v14, 2  ;;  %v720_v23 = vrot.slane %v719_v13, 1  ;;  %v734_v25 = vrot.slane %v733_v17, 4  ;;  %v2752_v37 = vpop.eup %2751  ;;  %v1131_v30 = vld [vmem:[%s3249_s7 + $0x18] sm:$0xff] }
  0xb1   : > { %v741_v19 = vsel %vm677_vm2, %v674_v6, 0.0  ;;  %v740_v26 = vsel %vm675_vm3, %v673_v18, 0.0  ;;  %v771_v41 = vmul.f32 %v2750_v29, %v685_v31  ;;  %v2754_v44 = vpop.eup %2753  ;;  %v777_v49 = vmul.f32 %v2752_v37, %v712_v33  ;;  %v974_v18 = vld [vmem:[%s3247_s5 + $0x8] sm:$0xff] }
  0xb2   : > { %v728_v53 = vadd.f32 %v727_v22, %v726_v14  ;;  %v742_v28 = vadd.f32 %v741_v19, %v740_v26  ;;  %v735_v32 = vadd.f32 %v734_v25, %v733_v17  ;;  %v805_v34 = vrot.slane %v773_v21, 7  ;;  %v2756_v48 = vpop.eup %2755  ;;  %v975_v17 = vld [vmem:[%s3247_s5 + $0x10] sm:$0xff]  ;;  %v973_v19 = vld [vmem:[%s3247_s5] sm:$0xff]  ;;  %v980_v26 = vld [vmem:[%s3248_s6 + $0x18] sm:$0xff] }
  0xb3   : > { %v721_v38 = vadd.f32 %v720_v23, %v719_v13  ;;  %v808_v52 = vrot.slane %v775_v40, 6  ;;  %v2758_v58 = vpop.eup %2757  ;;  %v811_v59 = vrot.slane %v777_v49, 5  ;;  %v898_v23 = vld [vmem:[%s549_s29] sm:$0xff] }
  0xb4   : > { %v729_v35 = vrot.slane %v728_v53, 1  ;;  %v743_v36 = vrot.slane %v742_v28, 4  ;;  %v736_v39 = vrot.slane %v735_v32, 2  ;;  %v807_v50 = vsel %vm806_vm4, %v805_v34, %v771_v41  ;;  %v1130_v34 = vld [vmem:[%s3249_s7 + $0x10] sm:$0xff]  ;;  %v2499_v41 = vld [vmem:[%s3250_s8] ss:$0 sm:$0xff] }
  0xb5   : > { %v779_v47 = vmul.f32 %v2754_v44, %v721_v38  ;;  %v810_v57 = vsel %vm809_vm5, %v808_v52, %v807_v50  ;;  %v2760_v4 = vpop.eup %2759 }
  0xb6   : > { %v730_v42 = vadd.f32 %v729_v35, %v728_v53  ;;  %v744_v43 = vadd.f32 %v743_v36, %v742_v28  ;;  %v737_v45 = vadd.f32 %v736_v39, %v735_v32  ;;  %v813_v3 = vsel %vm812_vm6, %v811_v59, %v810_v57  ;;  %v978_v53 = vld [vmem:[%s3248_s6 + $0x8] sm:$0xff]  ;;  %v977_v28 = vld [vmem:[%s3248_s6] sm:$0xff] }
  0xb7   : > { %v814_v61 = vrot.slane %v779_v47, 4  ;;  %v1129_v35 = vld [vmem:[%s3249_s7 + $0x8] sm:$0xff]  ;;  %v1128_v36 = vld [vmem:[%s3249_s7] sm:$0xff] }
  0xb8   : > { %v745_v46 = vrot.slane %v744_v43, 2  ;;  %v738_v51 = vrot.slane %v737_v45, 1  ;;  %v781_v54 = vmul.f32 %v2756_v48, %v730_v42 }
  0xb9   : > { %v816_v10 = vsel %vm815_vm7, %v814_v61, %v813_v3 }
  0xba   : > { %v746_v55 = vadd.f32 %v745_v46, %v744_v43  ;;  %v739_v56 = vadd.f32 %v738_v51, %v737_v45  ;;  %v817_v63 = vrot.slane %v781_v54, 3 }
  0xbc   : > { %v747_v60 = vrot.slane %v746_v55, 1  ;;  %v783_v62 = vmul.f32 %v2758_v58, %v739_v56  ;;  %v819_v11 = vsel %vm818_vm8, %v817_v63, %v816_v10 }
  0xbe   : > { %v748_v0 = vadd.f32 %v747_v60, %v746_v55  ;;  %v820_v6 = vrot.slane %v783_v62, 2 }
  0xc0   : > { %v785_v9 = vmul.f32 %v2760_v4, %v748_v0  ;;  %v822_v14 = vsel %vm821_vm9, %v820_v6, %v819_v11 }
  0xc2   : > { %v823_v13 = vrot.slane %v785_v9, 1 }
  0xc4   : > { %v825_v16 = vsel %vm824_vm10, %v823_v13, %v822_v14  ;;  %v1378_v13 = vld [vmem:[%s3251_s9] sm:$0xff] }
  0xc5   : > { %2594 = vmatmul.mubr.msk.f32.vlgmr.msra.gmra.mxu0 %vm675_vm3, %v825_v16 }
  0xc6   : > { %2613 = vmatpush3.msra.mxu0 %v976_v15  ;;  %2620 = vmatprep.mubr.msk.f32.mxu0 %vm2790_vm1, %v2789_v24 }
  0xc7   : > { %2614 = vmatprep.subr.mxu0 %v2789_v24 }
  0xc8   : > { %2615 = vmatpush3.msra.mxu0 %v975_v17 }
  0xc9   : > { %2616 = vmatprep.subr.mxu0 %v2789_v24 }
  0xca   : > { %2617 = vmatpush3.msra.mxu0 %v974_v18 }
  0xcb   : > { %2618 = vmatprep.subr.mxu0 %v2789_v24 }
  0xcc   : > { %2619 = vmatpush3.msra.mxu0 %v973_v19 }
  0xcd   : > { %2634 = vmatprep.subr.mxu0 %v2789_v24 }
 0x185   : > { %v894_v21 = vpop.f32.mrf.mxu0 }
 0x186   : > { %v895_v22 = vadd.f32 %v2494_v20, %v894_v21 }
 0x187   : > { %v2595_v25 = vpop.f32.mrf.mxu0 }
 0x188   : > { %2597 = vmatpush3.msra.mxu1 %v895_v22  ;;  %2621 = vmatmul.mubr.msk.f32.vlgmr.msra.gmra.mxu0 %vm675_vm3, %v895_v22  ;;  %v1625_v22 = vld [vmem:[%s3251_s9 + $0x8] sm:$0xff] }
 0x189   : > { %2599 = vmatmul.mubr.msk.f32.vlgmr.msra.gmra.mxu1 %vm899_vm11, %v898_v23  ;;  %2601 = vmatprep.subr.mxu1 %v2789_v24 }
 0x18a   : > { %2602 = vmatpush3.msra.mxu1 %v980_v26  ;;  %2609 = vmatprep.mubr.msk.f32.mxu1 %vm2790_vm1, %v2789_v24 }
 0x18b   : > { %2603 = vmatprep.subr.mxu1 %v2789_v24  ;;  %2636 = vmatprep.mubr.msk.f32.mxu0 %vm2790_vm1, %v2789_v24 }
 0x18c   : > { %2604 = vmatpush3.msra.mxu1 %v979_v27 }
 0x18d   : > { %2605 = vmatprep.subr.mxu1 %v2789_v24 }
 0x18e   : > { %2606 = vmatpush3.msra.mxu1 %v978_v53 }
 0x18f   : > { %2607 = vmatprep.subr.mxu1 %v2789_v24 }
 0x190   : > { %2608 = vmatpush3.msra.mxu1 %v977_v28 }
 0x191   : > { %2623 = vmatprep.subr.mxu1 %v2789_v24 }
 0x248   : > { %v1123_v29 = vpop.f32.mrf.mxu0 }
 0x249   : > { %v969_v31 = vpop.f32.mrf.mxu1 }
 0x24a   : > { %2610 = vmatmul.mubr.msk.f32.vlgmr.msra.gmra.mxu1 %vm675_vm3, %v969_v31  ;;  %v2622_v32 = vpop.f32.mrf.mxu0 }
 0x24b   : > { %v2600_v33 = vpop.f32.mrf.mxu1  ;;  %2624 = vmatpush3.msra.mxu1 %v1131_v30  ;;  %2631 = vmatprep.mubr.msk.f32.mxu1 %vm2790_vm1, %v2789_v24 }
 0x24c   : > { %2625 = vmatprep.subr.mxu1 %v2789_v24 }
 0x24d   : > { %2626 = vmatpush3.msra.mxu1 %v1130_v34 }
 0x24e   : > { %2627 = vmatprep.subr.mxu1 %v2789_v24 }
 0x24f   : > { %2628 = vmatpush3.msra.mxu1 %v1129_v35 }
 0x250   : > { %2629 = vmatprep.subr.mxu1 %v2789_v24 }
 0x251   : > { %2630 = vmatpush3.msra.mxu1 %v1128_v36  ;;  %v2505_v36 = vld [vmem:[%s3252_s10] ss:$0 sm:$0xff] }
 0x252   : > { %2649 = vmatprep.subr.mxu1 %v2789_v24 }
 0x30a   : > { %v1050_v37 = vpop.f32.mrf.mxu1 }
 0x30b   : > { %v3067_v38 = vadd.f32 %v1123_v29, %v1050_v37 }
 0x30c   : > { %v2611_v39 = vpop.f32.mrf.mxu1 }
 0x30d   : > { %v1127_v40 = vmax.f32 %v3067_v38, 0.0  ;;  %v2209_v38 = vld [vmem:[%s3254_s12 + $0x8] sm:$0xff] }
 0x30f   : > { %2632 = vmatmul.mubr.msk.f32.vlgmr.msra.gmra.mxu1 %vm675_vm3, %v1127_v40 }
 0x310   : > { %2651 = vmatprep.mubr.msk.f32.mxu1 %vm2790_vm1, %v2789_v24 }
 0x3cf   : > { %v1208_v42 = vpop.f32.mrf.mxu1 }
 0x3d0   : > { %v3078_v43 = vadd.f32 %v2499_v41, %v1208_v42 }
 0x3d1   : > { %v2633_v44 = vpop.f32.mrf.mxu1 }
 0x3d2   : > { %1461 = vrot.lane.b32.xlu1 %v3078_v43, %s2791_s19  ;;  %1214 = vrot.lane.b32.xlu0 %v3078_v43, %s2792_s20  ;;  %s2800_s19 = smov 48  }
 0x3d6   : > { %1459 = vrot.lane.b32.xlu0 %v3078_v43, %s2793_s24 }
 0x444   : > { %v1462_v45 = vpop.permute.xlu1 %1461  ;;  %v1215_v48 = vpop.permute.xlu0 %1214 }
 0x445   : > { %2635 = vmatpush3.xpose.msk.msra.mxu0 %vm899_vm11, %v1215_v48  ;;  %2650 = vmatpush3.xpose.msk.msra.mxu1 %vm899_vm11, %v1462_v45 }
 0x446   : > { %2639 = vmatprep.subr.mxu0 %v2789_v24  ;;  %2659 = vmatprep.subr.mxu1 %v2789_v24 }
 0x448   : > { %2637 = vmatmul.mubr.msk.f32.vlgmr.msra.gmra.mxu0 %vm899_vm11, %v3078_v43  ;;  %v1460_v49 = vpop.permute.xlu0 %1459 }
 0x449   : > { %2652 = vmatmul.mubr.msk.f32.vlgmr.msra.gmra.mxu1 %vm899_vm11, %v1460_v49  ;;  %2641 = vmatprep.mubr.msk.f32.mxu0 %vm2790_vm1, %v2789_v24 }
 0x44a   : > { %2661 = vmatprep.mubr.msk.f32.mxu1 %vm2790_vm1, %v2789_v24  ;;  %2660 = vmatpush3.msra.mxu1 %v1625_v22 }
 0x44b   : > { %2669 = vmatprep.subr.mxu1 %v2789_v24 }
 0x508   : > { %v1286_v50 = vpop.f32.mrf.mxu0 }
 0x509   : > { %v1290_v46 = vmul.f32 0.35355338, %v1286_v50  ;;  %v1533_v47 = vpop.f32.mrf.mxu1 }
 0x50a   : > { %v2638_v51 = vpop.f32.mrf.mxu0  ;;  %v1537_v52 = vmul.f32 0.35355338, %v1533_v47  ;;  %v1866_v47 = vld [vmem:[%s3251_s9 + $0x10] sm:$0xff] }
 0x50b   : > { %v2653_v54 = vpop.f32.mrf.mxu1  ;;  %v1291_v55 = vsel %vm899_vm11, %v1290_v46, -inf }
 0x50c   : > { %1292 = vmax.xlane.f32.xlu1 %v1291_v55  ;;  %v1538_v56 = vsel %vm899_vm11, %v1537_v52, -inf }
 0x510   : > { %1539 = vmax.xlane.f32.xlu1 %v1538_v56 }
 0x595   : > { %v1293_v57 = vpop.xlane.xlu1 %1292 }
 0x596   : > { %v1294_v58 = vsub.f32 %v1290_v46, %v1293_v57 }
 0x598   : > { %v1295_v59 = vmul.f32 1.442695, %v1294_v58 }
 0x599   : > { %v1540_v60 = vpop.xlane.xlu1 %1539 }
 0x59a   : > { %2761 = vpow2.f32 %v1295_v59  ;;  %v1541_v61 = vsub.f32 %v1537_v52, %v1540_v60 }
 0x59c   : > { %v1542_v62 = vmul.f32 1.442695, %v1541_v61 }
 0x59e   : > { %2763 = vpow2.f32 %v1542_v62 }
 0x5a7   : > { %v2762_v63 = vpop.eup %2761 }
 0x5a8   : > { %v1297_v0 = vsel %vm899_vm11, %v2762_v63, 0.0 }
 0x5a9   : > { %1298 = vadd.xlane.f32.xlu0 %v1297_v0  ;;  %v2107_v0 = vld [vmem:[%s3251_s9 + $0x18] sm:$0xff] }
 0x5ab   : > { %v2764_v3 = vpop.eup %2763 }
 0x5ac   : > { %v1544_v4 = vsel %vm899_vm11, %v2764_v3, 0.0 }
 0x5ad   : > { %1545 = vadd.xlane.f32.xlu1 %v1544_v4 }
 0x5be   : > { %1549 = vrot.lane.b32.xlu1 %v3078_v43, %s2794_s25 }
 0x5bf   : > { %1302 = vrot.lane.b32.xlu0 %v3078_v43, %s2795_s26 }
 0x5c3   : > { %1702 = vrot.lane.b32.xlu0 %v3078_v43, %s2796_s27  ;;  %s2801_s27 = smov 40  }
 0x5c7   : > { %1700 = vrot.lane.b32.xlu0 %v3078_v43, %s2797_s28 }
 0x632   : > { %v1299_v6 = vpop.xlane.xlu0 %1298 }
 0x633   : > { %2765 = vrcp.f32 %v1299_v6 }
 0x636   : > { %v1303_v9 = vpop.permute.xlu0 %1302  ;;  %v1546_v14 = vpop.xlane.xlu1 %1545 }
 0x637   : > { %2640 = vmatpush3.msra.mxu0 %v1303_v9  ;;  %2767 = vrcp.f32 %v1546_v14 }
 0x638   : > { %2644 = vmatprep.subr.mxu0 %v2789_v24 }
 0x63a   : > { %v1550_v17 = vpop.permute.xlu1 %1549  ;;  %v1703_v18 = vpop.permute.xlu0 %1702 }
 0x63e   : > { %v1701_v21 = vpop.permute.xlu0 %1700 }
 0x640   : > { %v2766_v10 = vpop.eup %2765 }
 0x641   : > { %v1301_v11 = vmul.f32 %v2766_v10, %v2762_v63 }
 0x643   : > { %2642 = vmatmul.mubr.msk.f32.vlgmr.msra.gmra.mxu0 %vm899_vm11, %v1301_v11 }
 0x644   : > { %2645 = vmatpush3.msra.mxu0 %v1378_v13  ;;  %2646 = vmatprep.mubr.msk.f32.mxu0 %vm2790_vm1, %v2789_v24  ;;  %v2768_v15 = vpop.eup %2767 }
 0x645   : > { %2654 = vmatprep.subr.mxu0 %v2789_v24  ;;  %v1548_v20 = vmul.f32 %v2768_v15, %v2764_v3 }
 0x703   : > { %v1374_v16 = vpop.f32.mrf.mxu0 }
 0x704   : > { %2647 = vmatmul.mubr.msk.f32.vlgmr.msra.gmra.mxu0 %vm899_vm11, %v1374_v16 }
 0x705   : > { %2655 = vmatpush3.msra.mxu0 %v1550_v17  ;;  %v2643_v19 = vpop.f32.mrf.mxu0  ;;  %2656 = vmatprep.mubr.msk.f32.mxu0 %vm2790_vm1, %v2789_v24 }
 0x706   : > { %2664 = vmatprep.subr.mxu0 %v2789_v24 }
 0x708   : > { %2657 = vmatmul.mubr.msk.f32.vlgmr.msra.gmra.mxu0 %vm899_vm11, %v1548_v20 }
 0x709   : > { %2665 = vmatpush3.xpose.msk.msra.mxu0 %vm899_vm11, %v1703_v18  ;;  %2666 = vmatprep.mubr.msk.f32.mxu0 %vm2790_vm1, %v2789_v24 }
 0x70a   : > { %2674 = vmatprep.subr.mxu0 %v2789_v24 }
 0x70c   : > { %2667 = vmatmul.mubr.msk.f32.vlgmr.msra.gmra.mxu0 %vm899_vm11, %v1701_v21 }
 0x70d   : > { %2676 = vmatprep.mubr.msk.f32.mxu0 %vm2790_vm1, %v2789_v24  ;;  %2675 = vmatpush3.msra.mxu0 %v1866_v47 }
 0x70e   : > { %2684 = vmatprep.subr.mxu0 %v2789_v24 }
 0x7c4   : > { %v1448_v23 = vpop.f32.mrf.mxu0 }
 0x7c5   : > { %v1458_v37 = vadd.f32 %v2505_v36, %v1448_v23  ;;  %v2206_v36 = vrot.slane %v2912_v5, %v584_v2  ;;  %v2518_v2 = vld [vmem:[%s3255_s13] ss:$0 sm:$0xff] }
 0x7c6   : > { %v2648_v25 = vpop.f32.mrf.mxu0 }
 0x7c7   : > { %v2211_v25 = vld [vmem:[%s3254_s12 + $0x18] sm:$0xff] }
 0x7c8   : > { %v1621_v26 = vpop.f32.mrf.mxu0 }
 0x7c9   : > { %2662 = vmatmul.mubr.msk.f32.vlgmr.msra.gmra.mxu1 %vm899_vm11, %v1621_v26  ;;  %v2210_v26 = vld [vmem:[%s3254_s12 + $0x10] sm:$0xff] }
 0x7ca   : > { %v2658_v27 = vpop.f32.mrf.mxu0  ;;  %2671 = vmatprep.mubr.msk.f32.mxu1 %vm2790_vm1, %v2789_v24 }
 0x7cb   : > { %v2300_v27 = vld [vmem:[%s3256_s14 + $0x38] sm:$0xff] }
 0x7cc   : > { %v1774_v53 = vpop.f32.mrf.mxu0 }
 0x7cd   : > { %v1778_v28 = vmul.f32 0.35355338, %v1774_v53  ;;  %v2299_v53 = vld [vmem:[%s3256_s14 + $0x30] sm:$0xff] }
 0x7ce   : > { %v2668_v29 = vpop.f32.mrf.mxu0 }
 0x7cf   : > { %v1779_v30 = vsel %vm899_vm11, %v1778_v28, -inf  ;;  %v2297_v29 = vld [vmem:[%s3256_s14 + $0x20] sm:$0xff] }
 0x7d0   : > { %1780 = vmax.xlane.f32.xlu1 %v1779_v30  ;;  %v2296_v30 = vld [vmem:[%s3256_s14 + $0x18] sm:$0xff] }
 0x7e1   : > { %1943 = vrot.lane.b32.xlu1 %v3078_v43, %s2798_s17 }
 0x7e5   : > { %1941 = vrot.lane.b32.xlu1 %v3078_v43, %s2799_s18  ;;  %s553_s18 = scalar_lea.vmem %s3258_s16, %s2900_s23 }
 0x859   : > { %v1781_v31 = vpop.xlane.xlu1 %1780 }
 0x85a   : > { %v1782_v32 = vsub.f32 %v1778_v28, %v1781_v31  ;;  %v2298_v28 = vld [vmem:[%s3256_s14 + $0x28] sm:$0xff] }
 0x85c   : > { %v1783_v33 = vmul.f32 1.442695, %v1782_v32 }
 0x85d   : > { %v1944_v49 = vpop.permute.xlu1 %1943 }
 0x85e   : > { %2769 = vpow2.f32 %v1783_v33 }
 0x861   : > { %v1942_v46 = vpop.permute.xlu1 %1941 }
 0x86b   : > { %v2770_v34 = vpop.eup %2769 }
 0x86c   : > { %v1785_v35 = vsel %vm899_vm11, %v2770_v34, 0.0 }
 0x86d   : > { %1786 = vadd.xlane.f32.xlu0 %v1785_v35 }
 0x883   : > { %1790 = vrot.lane.b32.xlu0 %v3078_v43, %s2800_s19 }
 0x889   : > { %v1695_v39 = vpop.f32.mrf.mxu1 }
 0x88a   : > { %v1699_v41 = vadd.f32 %v1695_v39, %v1458_v37 }
 0x88b   : > { %v2663_v42 = vpop.f32.mrf.mxu1 }
 0x88c   : > { %v2295_v42 = vld [vmem:[%s3256_s14 + $0x10] sm:$0xff] }
 0x8f6   : > { %v1787_v44 = vpop.xlane.xlu0 %1786 }
 0x8f7   : > { %2771 = vrcp.f32 %v1787_v44  ;;  %v2294_v44 = vld [vmem:[%s3256_s14 + $0x8] sm:$0xff] }
 0x8fa   : > { %v1791_v45 = vpop.permute.xlu0 %1790 }
 0x8fb   : > { %2670 = vmatpush3.msra.mxu1 %v1791_v45 }
 0x8fc   : > { %2679 = vmatprep.subr.mxu1 %v2789_v24 }
 0x904   : > { %v2772_v48 = vpop.eup %2771 }
 0x905   : > { %v1789_v50 = vmul.f32 %v2772_v48, %v2770_v34  ;;  %v2201_v34 = vrot.slane %v2912_v5, %v573_v12 }
 0x907   : > { %2672 = vmatmul.mubr.msk.f32.vlgmr.msra.gmra.mxu1 %vm899_vm11, %v1789_v50 }
 0x908   : > { %2680 = vmatpush3.xpose.msk.msra.mxu1 %vm899_vm11, %v1944_v49  ;;  %2681 = vmatprep.mubr.msk.f32.mxu1 %vm2790_vm1, %v2789_v24  ;;  %v2520_v49 = vld [vmem:[%s3257_s15] ss:$0 sm:$0xff] }
 0x909   : > { %2689 = vmatprep.subr.mxu1 %v2789_v24 }
 0x90b   : > { %2682 = vmatmul.mubr.msk.f32.vlgmr.msra.gmra.mxu1 %vm899_vm11, %v1942_v46 }
 0x90c   : > { %2691 = vmatprep.mubr.msk.f32.mxu1 %vm2790_vm1, %v2789_v24  ;;  %2690 = vmatpush3.msra.mxu1 %v2107_v0 }
 0x90d   : > { %2705 = vmatprep.subr.mxu1 %v2789_v24 }
 0x9c7   : > { %v1862_v51 = vpop.f32.mrf.mxu1 }
 0x9c8   : > { %2677 = vmatmul.mubr.msk.f32.vlgmr.msra.gmra.mxu0 %vm899_vm11, %v1862_v51 }
 0x9c9   : > { %v2673_v52 = vpop.f32.mrf.mxu1  ;;  %2686 = vmatprep.mubr.msk.f32.mxu0 %vm2790_vm1, %v2789_v24 }
 0x9cb   : > { %v2015_v54 = vpop.f32.mrf.mxu1 }
 0x9cc   : > { %v2019_v55 = vmul.f32 0.35355338, %v2015_v54 }
 0x9cd   : > { %v2683_v56 = vpop.f32.mrf.mxu1 }
 0x9ce   : > { %v2020_v57 = vsel %vm899_vm11, %v2019_v55, -inf }
 0x9cf   : > { %2021 = vmax.xlane.f32.xlu0 %v2020_v57 }
 0x9e5   : > { %2031 = vrot.lane.b32.xlu0 %v3078_v43, %s2801_s27 }
 0xa58   : > { %v2022_v58 = vpop.xlane.xlu0 %2021 }
 0xa59   : > { %v2023_v59 = vsub.f32 %v2019_v55, %v2022_v58 }
 0xa5b   : > { %v2024_v60 = vmul.f32 1.442695, %v2023_v59 }
 0xa5c   : > { %v2032_v61 = vpop.permute.xlu0 %2031 }
 0xa5d   : > { %2773 = vpow2.f32 %v2024_v60  ;;  %2685 = vmatpush3.msra.mxu0 %v2032_v61 }
 0xa5e   : > { %2694 = vmatprep.subr.mxu0 %v2789_v24 }
 0xa6a   : > { %v2774_v62 = vpop.eup %2773 }
 0xa6b   : > { %v2026_v63 = vsel %vm899_vm11, %v2774_v62, 0.0 }
 0xa6c   : > { %2027 = vadd.xlane.f32.xlu1 %v2026_v63 }
 0xa88   : > { %v1936_v3 = vpop.f32.mrf.mxu0 }
 0xa89   : > { %v1940_v43 = vadd.f32 %v1936_v3, %v1699_v41 }
 0xa8a   : > { %v2678_v4 = vpop.f32.mrf.mxu0 }
 0xaf5   : > { %v2028_v6 = vpop.xlane.xlu1 %2027 }
 0xaf6   : > { %2775 = vrcp.f32 %v2028_v6 }
 0xb03   : > { %v2776_v9 = vpop.eup %2775 }
 0xb04   : > { %v2030_v10 = vmul.f32 %v2776_v9, %v2774_v62 }
 0xb06   : > { %2687 = vmatmul.mubr.msk.f32.vlgmr.msra.gmra.mxu0 %vm899_vm11, %v2030_v10 }
 0xb07   : > { %2702 = vmatprep.mubr.msk.f32.mxu0 %vm2790_vm1, %v2789_v24  ;;  %2695 = vmatpush3.msra.mxu0 %v2211_v25 }
 0xb08   : > { %2696 = vmatprep.subr.mxu0 %v2789_v24 }
 0xb09   : > { %2697 = vmatpush3.msra.mxu0 %v2210_v26 }
 0xb0a   : > { %2698 = vmatprep.subr.mxu0 %v2789_v24 }
 0xb0b   : > { %2699 = vmatpush3.msra.mxu0 %v2209_v38 }
 0xb0c   : > { %2700 = vmatprep.subr.mxu0 %v2789_v24 }
 0xbc6   : > { %v2103_v11 = vpop.f32.mrf.mxu0 }
 0xbc7   : > { %2692 = vmatmul.mubr.msk.f32.vlgmr.msra.gmra.mxu1 %vm899_vm11, %v2103_v11 }
 0xbc8   : > { %v2688_v13 = vpop.f32.mrf.mxu0  ;;  %2721 = vmatprep.mubr.msk.f32.mxu1 %vm2790_vm1, %v2789_v24  ;;  %2706 = vmatpush3.msra.mxu1 %v2300_v27 }
 0xbc9   : > { %2707 = vmatprep.subr.mxu1 %v2789_v24 }
 0xbca   : > { %2708 = vmatpush3.msra.mxu1 %v2299_v53 }
 0xbcb   : > { %2709 = vmatprep.subr.mxu1 %v2789_v24 }
 0xbcc   : > { %2710 = vmatpush3.msra.mxu1 %v2298_v28 }
 0xbcd   : > { %2711 = vmatprep.subr.mxu1 %v2789_v24 }
 0xbce   : > { %2712 = vmatpush3.msra.mxu1 %v2297_v29 }
 0xbcf   : > { %2713 = vmatprep.subr.mxu1 %v2789_v24 }
 0xbd0   : > { %2714 = vmatpush3.msra.mxu1 %v2296_v30 }
 0xbd1   : > { %2715 = vmatprep.subr.mxu1 %v2789_v24 }
 0xbd2   : > { %2716 = vmatpush3.msra.mxu1 %v2295_v42 }
 0xbd3   : > { %2717 = vmatprep.subr.mxu1 %v2789_v24 }
 0xbd4   : > { %2718 = vmatpush3.msra.mxu1 %v2294_v44 }
 0xbd5   : > { %2719 = vmatprep.subr.mxu1 %v2789_v24 }
 0xbd6   : > { %2720 = vmatpush3.msra.mxu1 %v2293_v1 }
 0xc87   : > { %v2177_v14 = vpop.f32.mrf.mxu1 }
 0xc88   : > { %v2181_v15 = vadd.f32 %v2177_v14, %v1940_v43 }
 0xc89   : > { %v2693_v16 = vpop.f32.mrf.mxu1 }
 0xc8a   : > { %v2183_v17 = vadd.f32 %v2181_v15, %v1127_v40  ;;  %v2208_v40 = vld [vmem:[%s3254_s12] sm:$0xff] }
 0xc8b   : > { %2701 = vmatpush3.msra.mxu0 %v2208_v40 }
 0xc8c   : > { %v2184_v18 = vsel %vm675_vm3, %v2183_v17, 0.0 }
 0xc8d   : > { %2185 = vadd.xlane.f32.xlu1 %v2184_v18 }
 0xd16   : > { %v2186_v19 = vpop.xlane.xlu1 %2185 }
 0xd17   : > { %v2188_v20 = vmul.f32 0.03125, %v2186_v19 }
 0xd19   : > { %v2189_v21 = vsub.f32 %v2183_v17, %v2188_v20 }
 0xd1b   : > { %v2190_v22 = vmul.f32 %v2189_v21, %v2189_v21 }
 0xd1d   : > { %v2191_v23 = vsel %vm675_vm3, %v2190_v22, 0.0 }
 0xd1e   : > { %2192 = vadd.xlane.f32.xlu1 %v2191_v23 }
 0xda7   : > { %v2193_v31 = vpop.xlane.xlu1 %2192 }
 0xda8   : > { %v2194_v32 = vmul.f32 0.03125, %v2193_v31 }
 0xdaa   : > { %v2195_v33 = vadd.f32 1e-05, %v2194_v32 }
 0xdac   : > { %2777 = vrsqrt.f32 %v2195_v33 }
 0xdb9   : > { %v2778_v35 = vpop.eup %2777 }
 0xdba   : > { %v2197_v37 = vmul.f32 %v2778_v35, %v2189_v21 }
 0xdbc   : > { %v2202_v39 = vmul.f32 %v2201_v34, %v2197_v37 }
 0xdbe   : > { %v2207_v41 = vadd.f32 %v2206_v36, %v2202_v39 }
 0xdc0   : > { %2703 = vmatmul.mubr.msk.f32.vlgmr.msra.gmra.mxu0 %vm675_vm3, %v2207_v41 }
 0xe80   : > { %v2288_v5 = vpop.f32.mrf.mxu0 }
 0xe81   : > { %v2289_v12 = vadd.f32 %v2518_v2, %v2288_v5 }
 0xe82   : > { %v2704_v45 = vpop.f32.mrf.mxu0 }
 0xe83   : > { %v2292_v48 = vmax.f32 %v2289_v12, 0.0 }
 0xe85   : > { %2722 = vmatmul.mubr.msk.f32.vlgmr.msra.gmra.mxu1 %vm2308_vm12, %v2292_v48 }
 0xf45   : > { %v2378_v50 = vpop.f32.mrf.mxu1 }
 0xf46   : > { %v2379_v46 = vadd.f32 %v2520_v49, %v2378_v50 }
 0xf47   : > { %v2723_v47 = vpop.f32.mrf.mxu1 }
 0xf48   : > { %v2382_v51 = vadd.f32 %v2379_v46, %v2207_v41 }
 0xf4a   : > { %v2383_v24 = vsel %vm675_vm3, %v2382_v51, 0.0 }
 0xf4b   : > { %2384 = vadd.xlane.f32.xlu1 %v2383_v24 }
 0xfd4   : > { %v2385_v52 = vpop.xlane.xlu1 %2384 }
 0xfd5   : > { %v2386_v54 = vmul.f32 0.03125, %v2385_v52 }
 0xfd7   : > { %v2387_v55 = vsub.f32 %v2382_v51, %v2386_v54 }
 0xfd9   : > { %v2388_v56 = vmul.f32 %v2387_v55, %v2387_v55 }
 0xfdb   : > { %v2389_v57 = vsel %vm675_vm3, %v2388_v56, 0.0 }
 0xfdc   : > { %2390 = vadd.xlane.f32.xlu1 %v2389_v57 }
0x1065   : > { %v2391_v58 = vpop.xlane.xlu1 %2390 }
0x1066   : > { %v2392_v59 = vmul.f32 0.03125, %v2391_v58 }
0x1068   : > { %v2393_v60 = vadd.f32 1e-05, %v2392_v59 }
0x106a   : > { %2779 = vrsqrt.f32 %v2393_v60 }
0x1077   : > { %v2780_v61 = vpop.eup %2779 }
0x1078   : > { %v2395_v62 = vmul.f32 %v2780_v61, %v2387_v55 }
0x107a   : > { %v2400_v63 = vmul.f32 %v2915_v7, %v2395_v62 }
0x107c   : > { %v2405_v0 = vadd.f32 %v2918_v8, %v2400_v63 }
0x107e   : > { %2406 = vst.msk [vmem:[%s553_s18] sm:$0xff] %vm675_vm3, %v2405_v0 }
0x107f PF: > { %s26_s21 = sadd.s32 1, %s2787_s21  }
0x1080   : > { %p23_p4 = scmp.ge.s32.totalorder %s26_s21, 4  }
0x1082   :  { %25 = sbr.rel (!%p23_p4) target bundleno = 2 (0x2), region = 120 }

</bundles_post_ra>
